<compile_context>
chip_gen: v5e
topology: v5e:2x2
jax: 0.10.0
libtpu: 0.0.40
codegen_flags: <defaults>
</compile_context>

<pallas_src>
import functools
import math

import jax
import jax.numpy as jnp
from jax import lax
from jax.experimental import pallas as pl
from jax.experimental.pallas import tpu as pltpu


# ---------------------------------------------------------------------------
# Kernel
# ---------------------------------------------------------------------------
def _smoke_kernel(x_ref, w3_ref, a_ref, b_ref, w1c_ref, d1c_ref, w1r_ref, d1r_ref,
                  cls_ref, reg_ref,
                  *, Wp, Np, hc, classes, creg,
                  dim_s, dim_e, ori_s, ori_e, training, mm_dtype):
    """One (batch, row-tile) grid step.

    x_ref   : (1, 1, Cin, SLAB)  zero-padded, spatially flattened input slab
                                 (row stride Wp, 2 halo rows), bf16; auto-pipelined.
    w3_ref  : (9, 2*hc, Cin)     fused 3x3 weights of both heads (tap-major), bf16.
    a_ref   : (2*hc, 1)          folded eval-BatchNorm scale, f32.
    b_ref   : (2*hc, 1)          folded BN shift + conv bias, f32.
    w1c_ref : (classes, hc) bf16, d1c_ref : (classes, 1) f32   (class head 1x1)
    w1r_ref : (creg,   hc) bf16, d1r_ref : (creg,   1) f32     (reg   head 1x1)
    cls_ref : (1, classes, Np)   channel-major, lane-dense output block, f32.
    reg_ref : (1, creg,    Np)
    """
    # ---- fused 3x3 conv for BOTH heads: 9 accumulated channel-major matmuls ----
    # A spatial tap (dy, dx) of the padded image is a static lane offset into the
    # flattened slab, so the MXU RHS is a direct ref slice (no im2col scratch,
    # no transposes); the slab is never materialized as a whole value.
    acc = None
    for k in range(9):
        dy, dx = divmod(k, 3)
        off = dy * Wp + dx
        rhs = x_ref[0, 0, :, off:off + Np]                       # (Cin, Np) bf16
        part = jnp.dot(w3_ref[k], rhs, preferred_element_type=jnp.float32)
        acc = part if acc is None else acc + part                # (2*hc, Np) f32

    # folded eval-mode BatchNorm (+ conv bias), then ReLU (f32 on the VPU)
    h = jnp.maximum(acc * a_ref[...] + b_ref[...], 0.0)
    hb = h.astype(mm_dtype)

    # ---- per-head 1x1 convs on sublane-sliced halves of the fused hidden ----
    cls = jnp.dot(w1c_ref[...], hb[:hc, :],
                  preferred_element_type=jnp.float32) + d1c_ref[...]   # (classes, Np)
    reg = jnp.dot(w1r_ref[...], hb[hc:, :],
                  preferred_element_type=jnp.float32) + d1r_ref[...]   # (creg,    Np)

    # ---- post-processing (channels on sublanes, spatial stays lane-dense) ----
    cls = jax.nn.sigmoid(cls)                                    # sigmoid_hm
    if training:
        cls = jnp.clip(cls, 1e-4, 1.0 - 1e-4)

    ch = lax.broadcasted_iota(jnp.int32, (creg, 1), 0)
    dim_mask = (ch >= dim_s) & (ch < dim_e)
    ori_mask = (ch >= ori_s) & (ch < ori_e)

    dim_val = jax.nn.sigmoid(reg) - 0.5
    # F.normalize(p=2, dim=channel, eps=1e-12) restricted to the ori channels
    n2 = jnp.sum(jnp.where(ori_mask, reg * reg, 0.0), axis=0, keepdims=True)
    ori_val = reg * lax.rsqrt(jnp.maximum(n2, 1e-24))            # == reg / max(||.||, 1e-12)
    reg_out = jnp.where(dim_mask, dim_val, jnp.where(ori_mask, ori_val, reg))

    cls_ref[0] = cls.astype(cls_ref.dtype)
    reg_ref[0] = reg_out.astype(reg_ref.dtype)


# ---------------------------------------------------------------------------
# Parameter preparation (fold BN, fuse heads, go channel-major)
# ---------------------------------------------------------------------------
def _prepare_params(params, mm_dtype):
    eps = 1e-5

    def fold(p):
        scale = p["bn_gamma"] / jnp.sqrt(p["bn_var"] + eps)
        shift = p["bn_beta"] - p["bn_mean"] * scale
        cout, cin = p["w3"].shape[:2]
        # PyTorch (Cout, Cin, 3, 3) -> (9, Cout, Cin); tap k = dy*3 + dx
        w3 = jnp.transpose(p["w3"], (2, 3, 0, 1)).reshape(9, cout, cin)
        return w3, scale, p["b3"] * scale + shift, p["w1"], p["b1"]

    w3c, ac, bc, w1c, d1c = fold(params["class"])
    w3r, ar, br, w1r, d1r = fold(params["reg"])

    # fuse both heads' hidden layers along the output-channel (M) dim:
    # no zero padding, and both heads share one MXU RHS stream.
    w3f = jnp.concatenate([w3c, w3r], axis=1).astype(mm_dtype)    # (9, 2*hc, Cin)
    af = jnp.concatenate([ac, ar])[:, None]                       # (2*hc, 1) f32
    bf = jnp.concatenate([bc, br])[:, None]                       # (2*hc, 1) f32

    return (w3f, af, bf,
            w1c.astype(mm_dtype), d1c[:, None],                   # (classes, hc), (classes, 1)
            w1r.astype(mm_dtype), d1r[:, None])                   # (creg,   hc), (creg,   1)


def _choose_tiling(H, W, max_pixels):
    """Largest row-tile TH dividing H (TH == H allowed) such that, with the
    smallest padded flat row width Wp >= W + 2 making TH*Wp a multiple of 128
    (lane-dense matmul N and stores), the tile stays within max_pixels columns."""
    best = None
    for th in range(1, H + 1):
        if H % th:
            continue
        g = 128 // math.gcd(th, 128)
        wp = ((W + 2 + g - 1) // g) * g
        if best is None or th * wp <= max_pixels:
            best = (th, wp)
    return best


# ---------------------------------------------------------------------------
# Wrapper
# ---------------------------------------------------------------------------
def smoke_predictor_forward(x_nchw, params, reg_channels, training=False,
                            mm_dtype=jnp.bfloat16, max_pixels=4096):
    """Pallas TPU forward pass of SMOKEPredictor (single regression head).

    max_pixels bounds the per-step tile (TH * Wp).  ~4K columns keeps the
    double-buffered blocks well inside v7x's 64 MiB VMEM even at production
    channel counts; on v5e/v6e (128 MiB) it can be raised to 8K-16K.
    """
    B, Cin, H, W = x_nchw.shape
    classes = params["class"]["w1"].shape[0]
    creg = params["reg"]["w1"].shape[0]            # regression * classes
    hc = params["class"]["w1"].shape[1]            # head_conv

    TH, Wp = _choose_tiling(H, W, max_pixels)
    HT = H // TH
    Np = TH * Wp                                   # matmul N / lane-dense store width
    SLAB = ((TH + 2) * Wp + 2 + 127) // 128 * 128  # flat slab length (+ zero tail)

    w3f, af, bf, w1c, d1c, w1r, d1r = _prepare_params(params, mm_dtype)

    # ---- build halo-duplicated, spatially flattened input slabs in HBM ----
    # One XLA pad + stack pass (channel-major, so no NCHW->NHWC transpose);
    # Pallas then auto-pipelines the per-tile DMA via a normal BlockSpec.
    xpad = jnp.pad(x_nchw.astype(mm_dtype),
                   ((0, 0), (0, 0), (1, 1), (1, Wp - W - 1)))     # (B, Cin, H+2, Wp)
    slabs = jnp.stack([xpad[:, :, i * TH:i * TH + TH + 2, :] for i in range(HT)],
                      axis=1)                                     # (B, HT, Cin, TH+2, Wp)
    slabs = slabs.reshape(B, HT, Cin, (TH + 2) * Wp)
    slabs = jnp.pad(slabs, ((0, 0), (0, 0), (0, 0), (0, SLAB - (TH + 2) * Wp)))

    dim_s, dim_e = sum(reg_channels[:2]), sum(reg_channels[:3])
    ori_s, ori_e = sum(reg_channels[:3]), sum(reg_channels)

    kernel = functools.partial(
        _smoke_kernel, Wp=Wp, Np=Np, hc=hc, classes=classes, creg=creg,
        dim_s=dim_s, dim_e=dim_e, ori_s=ori_s, ori_e=ori_e,
        training=training, mm_dtype=mm_dtype)

    def _full(shape):
        n = len(shape)
        return pl.BlockSpec(shape, lambda b, i, _n=n: (0,) * _n)

    grid_spec = pltpu.PrefetchScalarGridSpec(
        num_scalar_prefetch=0,
        grid=(B, HT),
        in_specs=[
            pl.BlockSpec((1, 1, Cin, SLAB), lambda b, i: (b, i, 0, 0)),  # input slab
            _full((9, 2 * hc, Cin)),                      # fused 3x3 weights (bf16)
            _full((2 * hc, 1)), _full((2 * hc, 1)),       # folded BN scale / shift
            _full((classes, hc)), _full((classes, 1)),    # class 1x1 weight / bias
            _full((creg, hc)), _full((creg, 1)),          # reg   1x1 weight / bias
        ],
        out_specs=[
            pl.BlockSpec((1, classes, Np), lambda b, i: (b, 0, i)),
            pl.BlockSpec((1, creg, Np), lambda b, i: (b, 0, i)),
        ],
    )

    # VMEM budget: double-buffered input/output blocks + resident weights
    # + the f32 accumulator / hidden working set the compiler keeps in VMEM.
    weight_bytes = ((w3f.size + w1c.size + w1r.size) * 2
                    + (af.size + bf.size + d1c.size + d1r.size) * 4)
    block_bytes = (2 * Cin * SLAB * 2                      # input slab, 2 buffers
                   + 2 * (classes + creg) * Np * 4         # output blocks, 2 buffers
                   + 2 * weight_bytes)
    hidden_bytes = 3 * (2 * hc) * Np * 4                   # acc / h / hb working set
    vmem_limit = int(min(max(2 * (block_bytes + hidden_bytes) + (2 << 20), 16 << 20),
                         64 << 20))

    cost = pl.CostEstimate(
        flops=int(2 * B * H * Wp * (9 * Cin * 2 * hc + hc * (classes + creg))),
        transcendentals=int(B * H * Wp * (classes + creg)),
        bytes_accessed=int(slabs.size * 2 + weight_bytes
                           + B * (classes + creg) * H * Wp * 4))

    cls_out, reg_out = pl.pallas_call(
        kernel,
        out_shape=(jax.ShapeDtypeStruct((B, classes, H * Wp), jnp.float32),
                   jax.ShapeDtypeStruct((B, creg, H * Wp), jnp.float32)),
        grid_spec=grid_spec,
        compiler_params=pltpu.CompilerParams(
            dimension_semantics=("parallel", "parallel"),   # B x row-tiles
            vmem_limit_bytes=vmem_limit),
        cost_estimate=cost,
    )(slabs, w3f, af, bf, w1c, d1c, w1r, d1r)

    # channel-major outputs already match NCHW; just crop the padded columns.
    head_class = cls_out.reshape(B, classes, H, Wp)[:, :, :, :W]
    head_regression = reg_out.reshape(B, creg, H, Wp)[:, :, :, :W]
    return [head_class, head_regression]


# ---------------------------------------------------------------------------
# Pure-JAX f32 reference (mirrors the PyTorch module) and synthetic params
# ---------------------------------------------------------------------------
def _reference_forward(x, params, reg_channels, training=False):
    eps = 1e-5
    dn = ('NCHW', 'OIHW', 'NCHW')

    def head(p):
        y = lax.conv_general_dilated(x, p["w3"], (1, 1), [(1, 1), (1, 1)],
                                     dimension_numbers=dn)
        y = y + p["b3"][None, :, None, None]
        scale = p["bn_gamma"] / jnp.sqrt(p["bn_var"] + eps)
        shift = p["bn_beta"] - p["bn_mean"] * scale
        y = jnp.maximum(y * scale[None, :, None, None] + shift[None, :, None, None], 0.0)
        y = lax.conv_general_dilated(y, p["w1"][:, :, None, None], (1, 1),
                                     [(0, 0), (0, 0)], dimension_numbers=dn)
        return y + p["b1"][None, :, None, None]

    cls = jax.nn.sigmoid(head(params["class"]))
    if training:
        cls = jnp.clip(cls, 1e-4, 1.0 - 1e-4)
    reg = head(params["reg"])
    ds_, de_ = sum(reg_channels[:2]), sum(reg_channels[:3])
    os_, oe_ = sum(reg_channels[:3]), sum(reg_channels)
    dim = jax.nn.sigmoid(reg[:, ds_:de_]) - 0.5
    ori = reg[:, os_:oe_]
    nrm = jnp.sqrt(jnp.sum(ori * ori, axis=1, keepdims=True))
    ori = ori / jnp.maximum(nrm, 1e-12)
    reg = reg.at[:, ds_:de_].set(dim).at[:, os_:oe_].set(ori)
    return [cls, reg]


def init_params(key, in_channels, head_conv, classes, regression):
    """Deterministic synthetic parameters in PyTorch's native weight layouts."""
    ks = jax.random.split(key, 16)

    def head(i, cout, final_bias_value):
        return {
            # PyTorch layouts: conv3x3 -> (Cout, Cin, 3, 3); conv1x1 -> (Cout, Cin)
            "w3": jax.random.normal(ks[i + 0], (head_conv, in_channels, 3, 3), jnp.float32) * 0.05,
            "b3": jax.random.normal(ks[i + 1], (head_conv,), jnp.float32) * 0.05,
            "bn_gamma": 1.0 + 0.1 * jax.random.normal(ks[i + 2], (head_conv,), jnp.float32),
            "bn_beta": 0.1 * jax.random.normal(ks[i + 3], (head_conv,), jnp.float32),
            "bn_mean": 0.1 * jax.random.normal(ks[i + 4], (head_conv,), jnp.float32),
            "bn_var": 1.0 + 0.1 * jnp.abs(jax.random.normal(ks[i + 5], (head_conv,), jnp.float32)),
            "w1": jax.random.normal(ks[i + 6], (cout, head_conv), jnp.float32) * 0.05,
            "b1": jnp.full((cout,), final_bias_value, jnp.float32),
        }

    return {
        # class_head[-1].bias.data.fill_(-2.19)
        "class": head(0, classes, -2.19),
        # _fill_fc_weights -> zero bias on the regression 1x1 conv
        "reg": head(8, regression * classes, 0.0),
    }


if __name__ == "__main__":
    key = jax.random.PRNGKey(0)
    B, Cin, H, W = 2, 8, 16, 16            # small synthetic shapes
    head_conv = 32                          # cfg.MODEL.SMOKE_HEAD.NUM_CHANNEL
    classes = 3                             # len(cfg.DATASETS.DETECT_CLASSES)
    reg_channels = (1, 2, 3, 2)             # cfg.MODEL.SMOKE_HEAD.REGRESSION_CHANNEL
    regression = sum(reg_channels)          # cfg.MODEL.SMOKE_HEAD.REGRESSION_HEADS

    kx, kp = jax.random.split(key)
    x = jax.random.normal(kx, (B, Cin, H, W), jnp.float32)   # NCHW, like PyTorch
    params = init_params(kp, Cin, head_conv, classes, regression)

    # TODO(synk): reg_multi_heads=True branch (4 separate heads + concat) is the
    # same conv pattern repeated; only the single-head variant is wired up here.
    head_class, head_regression = smoke_predictor_forward(
        x, params, reg_channels, training=False)
    jax.block_until_ready((head_class, head_regression))

    assert head_class.shape == (B, classes, H, W)
    assert head_regression.shape == (B, regression * classes, H, W)

    # bf16-tolerant correctness check against a pure-JAX f32 reference.
    # (The L2-normalized orientation channels are excluded from the tolerance
    #  check: normalization amplifies the deliberate bf16 quantization whenever
    #  a pixel's orientation norm is near zero.)
    ref_cls, ref_reg = _reference_forward(x, params, reg_channels, training=False)
    ori_s, ori_e = sum(reg_channels[:3]), sum(reg_channels)
    keep = [c for c in range(regression * classes) if not (ori_s <= c < ori_e)]
    err_cls = float(jnp.max(jnp.abs(head_class - ref_cls)))
    err_reg = float(jnp.max(jnp.abs(head_regression[:, keep] - ref_reg[:, keep])))
    assert err_cls < 2e-2 and err_reg < 2e-2, (err_cls, err_reg)

    print("KERNEL_OK")
</pallas_src>

<mosaic_0001>
module attributes {stable_mosaic.version = 11 : i64} {
  func.func @_smoke_kernel(%arg0: i32, %arg1: i32, %arg2: memref<1x1x8x512xbf16, #tpu.memory_space<vmem>>, %arg3: memref<9x64x8xbf16, #tpu.memory_space<vmem>>, %arg4: memref<64x1xf32, #tpu.memory_space<vmem>>, %arg5: memref<64x1xf32, #tpu.memory_space<vmem>>, %arg6: memref<3x32xbf16, #tpu.memory_space<vmem>>, %arg7: memref<3x1xf32, #tpu.memory_space<vmem>>, %arg8: memref<24x32xbf16, #tpu.memory_space<vmem>>, %arg9: memref<24x1xf32, #tpu.memory_space<vmem>>, %arg10: memref<1x3x384xf32, #tpu.memory_space<vmem>>, %arg11: memref<1x24x384xf32, #tpu.memory_space<vmem>>) attributes {dimension_semantics = [#tpu.dimension_semantics<parallel>, #tpu.dimension_semantics<parallel>], iteration_bounds = array<i64: 2, 1>, scalar_prefetch = 0 : i64, scratch_operands = 0 : i64, tpu.core_type = #tpu.core_type<tc>, window_params = [{transform_indices = @transform_0, window_bounds = array<i64: 1, 1, 8, 512>}, {pipeline_mode = #tpu.pipeline_mode<synchronous>, transform_indices = @transform_1, window_bounds = array<i64: 9, 64, 8>}, {pipeline_mode = #tpu.pipeline_mode<synchronous>, transform_indices = @transform_2, window_bounds = array<i64: 64, 1>}, {pipeline_mode = #tpu.pipeline_mode<synchronous>, transform_indices = @transform_3, window_bounds = array<i64: 64, 1>}, {pipeline_mode = #tpu.pipeline_mode<synchronous>, transform_indices = @transform_4, window_bounds = array<i64: 3, 32>}, {pipeline_mode = #tpu.pipeline_mode<synchronous>, transform_indices = @transform_5, window_bounds = array<i64: 3, 1>}, {pipeline_mode = #tpu.pipeline_mode<synchronous>, transform_indices = @transform_6, window_bounds = array<i64: 24, 32>}, {pipeline_mode = #tpu.pipeline_mode<synchronous>, transform_indices = @transform_7, window_bounds = array<i64: 24, 1>}, {transform_indices = @transform_8, window_bounds = array<i64: 1, 3, 384>}, {transform_indices = @transform_9, window_bounds = array<i64: 1, 24, 384>}]} {
    %c0 = arith.constant 0 : index
    %c0_0 = arith.constant 0 : index
    %c0_1 = arith.constant 0 : index
    %c0_2 = arith.constant 0 : index
    %0 = vector.load %arg2[%c0, %c0_0, %c0_1, %c0_2] : memref<1x1x8x512xbf16, #tpu.memory_space<vmem>>, vector<1x1x8x384xbf16>
    %1 = vector.shape_cast %0 : vector<1x1x8x384xbf16> to vector<8x384xbf16>
    %c0_3 = arith.constant 0 : index
    %c0_4 = arith.constant 0 : index
    %c0_5 = arith.constant 0 : index
    %2 = vector.load %arg3[%c0_3, %c0_4, %c0_5] : memref<9x64x8xbf16, #tpu.memory_space<vmem>>, vector<1x64x8xbf16>
    %3 = vector.shape_cast %2 : vector<1x64x8xbf16> to vector<64x8xbf16>
    %cst = arith.constant dense<0.000000e+00> : vector<64x384xf32>
    %4 = tpu.matmul %3, %1, %cst {dimension_numbers = #tpu.dot_dimension_numbers<[1], [0], [0], [1], [0, 0, 1, 1], [], []>} : vector<64x8xbf16>, vector<8x384xbf16>, vector<64x384xf32> -> vector<64x384xf32>
    %c0_6 = arith.constant 0 : index
    %c0_7 = arith.constant 0 : index
    %c0_8 = arith.constant 0 : index
    %c1 = arith.constant 1 : index
    %5 = vector.load %arg2[%c0_6, %c0_7, %c0_8, %c1] : memref<1x1x8x512xbf16, #tpu.memory_space<vmem>>, vector<1x1x8x384xbf16>
    %6 = vector.shape_cast %5 : vector<1x1x8x384xbf16> to vector<8x384xbf16>
    %c1_9 = arith.constant 1 : index
    %c0_10 = arith.constant 0 : index
    %c0_11 = arith.constant 0 : index
    %7 = vector.load %arg3[%c1_9, %c0_10, %c0_11] : memref<9x64x8xbf16, #tpu.memory_space<vmem>>, vector<1x64x8xbf16>
    %8 = vector.shape_cast %7 : vector<1x64x8xbf16> to vector<64x8xbf16>
    %cst_12 = arith.constant dense<0.000000e+00> : vector<64x384xf32>
    %9 = tpu.matmul %8, %6, %cst_12 {dimension_numbers = #tpu.dot_dimension_numbers<[1], [0], [0], [1], [0, 0, 1, 1], [], []>} : vector<64x8xbf16>, vector<8x384xbf16>, vector<64x384xf32> -> vector<64x384xf32>
    %10 = arith.addf %4, %9 : vector<64x384xf32>
    %c0_13 = arith.constant 0 : index
    %c0_14 = arith.constant 0 : index
    %c0_15 = arith.constant 0 : index
    %c2 = arith.constant 2 : index
    %11 = vector.load %arg2[%c0_13, %c0_14, %c0_15, %c2] : memref<1x1x8x512xbf16, #tpu.memory_space<vmem>>, vector<1x1x8x384xbf16>
    %12 = vector.shape_cast %11 : vector<1x1x8x384xbf16> to vector<8x384xbf16>
    %c2_16 = arith.constant 2 : index
    %c0_17 = arith.constant 0 : index
    %c0_18 = arith.constant 0 : index
    %13 = vector.load %arg3[%c2_16, %c0_17, %c0_18] : memref<9x64x8xbf16, #tpu.memory_space<vmem>>, vector<1x64x8xbf16>
    %14 = vector.shape_cast %13 : vector<1x64x8xbf16> to vector<64x8xbf16>
    %cst_19 = arith.constant dense<0.000000e+00> : vector<64x384xf32>
    %15 = tpu.matmul %14, %12, %cst_19 {dimension_numbers = #tpu.dot_dimension_numbers<[1], [0], [0], [1], [0, 0, 1, 1], [], []>} : vector<64x8xbf16>, vector<8x384xbf16>, vector<64x384xf32> -> vector<64x384xf32>
    %16 = arith.addf %10, %15 : vector<64x384xf32>
    %c0_20 = arith.constant 0 : index
    %c0_21 = arith.constant 0 : index
    %c0_22 = arith.constant 0 : index
    %c24 = arith.constant 24 : index
    %17 = vector.load %arg2[%c0_20, %c0_21, %c0_22, %c24] : memref<1x1x8x512xbf16, #tpu.memory_space<vmem>>, vector<1x1x8x384xbf16>
    %18 = vector.shape_cast %17 : vector<1x1x8x384xbf16> to vector<8x384xbf16>
    %c3 = arith.constant 3 : index
    %c0_23 = arith.constant 0 : index
    %c0_24 = arith.constant 0 : index
    %19 = vector.load %arg3[%c3, %c0_23, %c0_24] : memref<9x64x8xbf16, #tpu.memory_space<vmem>>, vector<1x64x8xbf16>
    %20 = vector.shape_cast %19 : vector<1x64x8xbf16> to vector<64x8xbf16>
    %cst_25 = arith.constant dense<0.000000e+00> : vector<64x384xf32>
    %21 = tpu.matmul %20, %18, %cst_25 {dimension_numbers = #tpu.dot_dimension_numbers<[1], [0], [0], [1], [0, 0, 1, 1], [], []>} : vector<64x8xbf16>, vector<8x384xbf16>, vector<64x384xf32> -> vector<64x384xf32>
    %22 = arith.addf %16, %21 : vector<64x384xf32>
    %c0_26 = arith.constant 0 : index
    %c0_27 = arith.constant 0 : index
    %c0_28 = arith.constant 0 : index
    %c25 = arith.constant 25 : index
    %23 = vector.load %arg2[%c0_26, %c0_27, %c0_28, %c25] : memref<1x1x8x512xbf16, #tpu.memory_space<vmem>>, vector<1x1x8x384xbf16>
    %24 = vector.shape_cast %23 : vector<1x1x8x384xbf16> to vector<8x384xbf16>
    %c4 = arith.constant 4 : index
    %c0_29 = arith.constant 0 : index
    %c0_30 = arith.constant 0 : index
    %25 = vector.load %arg3[%c4, %c0_29, %c0_30] : memref<9x64x8xbf16, #tpu.memory_space<vmem>>, vector<1x64x8xbf16>
    %26 = vector.shape_cast %25 : vector<1x64x8xbf16> to vector<64x8xbf16>
    %cst_31 = arith.constant dense<0.000000e+00> : vector<64x384xf32>
    %27 = tpu.matmul %26, %24, %cst_31 {dimension_numbers = #tpu.dot_dimension_numbers<[1], [0], [0], [1], [0, 0, 1, 1], [], []>} : vector<64x8xbf16>, vector<8x384xbf16>, vector<64x384xf32> -> vector<64x384xf32>
    %28 = arith.addf %22, %27 : vector<64x384xf32>
    %c0_32 = arith.constant 0 : index
    %c0_33 = arith.constant 0 : index
    %c0_34 = arith.constant 0 : index
    %c26 = arith.constant 26 : index
    %29 = vector.load %arg2[%c0_32, %c0_33, %c0_34, %c26] : memref<1x1x8x512xbf16, #tpu.memory_space<vmem>>, vector<1x1x8x384xbf16>
    %30 = vector.shape_cast %29 : vector<1x1x8x384xbf16> to vector<8x384xbf16>
    %c5 = arith.constant 5 : index
    %c0_35 = arith.constant 0 : index
    %c0_36 = arith.constant 0 : index
    %31 = vector.load %arg3[%c5, %c0_35, %c0_36] : memref<9x64x8xbf16, #tpu.memory_space<vmem>>, vector<1x64x8xbf16>
    %32 = vector.shape_cast %31 : vector<1x64x8xbf16> to vector<64x8xbf16>
    %cst_37 = arith.constant dense<0.000000e+00> : vector<64x384xf32>
    %33 = tpu.matmul %32, %30, %cst_37 {dimension_numbers = #tpu.dot_dimension_numbers<[1], [0], [0], [1], [0, 0, 1, 1], [], []>} : vector<64x8xbf16>, vector<8x384xbf16>, vector<64x384xf32> -> vector<64x384xf32>
    %34 = arith.addf %28, %33 : vector<64x384xf32>
    %c0_38 = arith.constant 0 : index
    %c0_39 = arith.constant 0 : index
    %c0_40 = arith.constant 0 : index
    %c48 = arith.constant 48 : index
    %35 = vector.load %arg2[%c0_38, %c0_39, %c0_40, %c48] : memref<1x1x8x512xbf16, #tpu.memory_space<vmem>>, vector<1x1x8x384xbf16>
    %36 = vector.shape_cast %35 : vector<1x1x8x384xbf16> to vector<8x384xbf16>
    %c6 = arith.constant 6 : index
    %c0_41 = arith.constant 0 : index
    %c0_42 = arith.constant 0 : index
    %37 = vector.load %arg3[%c6, %c0_41, %c0_42] : memref<9x64x8xbf16, #tpu.memory_space<vmem>>, vector<1x64x8xbf16>
    %38 = vector.shape_cast %37 : vector<1x64x8xbf16> to vector<64x8xbf16>
    %cst_43 = arith.constant dense<0.000000e+00> : vector<64x384xf32>
    %39 = tpu.matmul %38, %36, %cst_43 {dimension_numbers = #tpu.dot_dimension_numbers<[1], [0], [0], [1], [0, 0, 1, 1], [], []>} : vector<64x8xbf16>, vector<8x384xbf16>, vector<64x384xf32> -> vector<64x384xf32>
    %40 = arith.addf %34, %39 : vector<64x384xf32>
    %c0_44 = arith.constant 0 : index
    %c0_45 = arith.constant 0 : index
    %c0_46 = arith.constant 0 : index
    %c49 = arith.constant 49 : index
    %41 = vector.load %arg2[%c0_44, %c0_45, %c0_46, %c49] : memref<1x1x8x512xbf16, #tpu.memory_space<vmem>>, vector<1x1x8x384xbf16>
    %42 = vector.shape_cast %41 : vector<1x1x8x384xbf16> to vector<8x384xbf16>
    %c7 = arith.constant 7 : index
    %c0_47 = arith.constant 0 : index
    %c0_48 = arith.constant 0 : index
    %43 = vector.load %arg3[%c7, %c0_47, %c0_48] : memref<9x64x8xbf16, #tpu.memory_space<vmem>>, vector<1x64x8xbf16>
    %44 = vector.shape_cast %43 : vector<1x64x8xbf16> to vector<64x8xbf16>
    %cst_49 = arith.constant dense<0.000000e+00> : vector<64x384xf32>
    %45 = tpu.matmul %44, %42, %cst_49 {dimension_numbers = #tpu.dot_dimension_numbers<[1], [0], [0], [1], [0, 0, 1, 1], [], []>} : vector<64x8xbf16>, vector<8x384xbf16>, vector<64x384xf32> -> vector<64x384xf32>
    %46 = arith.addf %40, %45 : vector<64x384xf32>
    %c0_50 = arith.constant 0 : index
    %c0_51 = arith.constant 0 : index
    %c0_52 = arith.constant 0 : index
    %c50 = arith.constant 50 : index
    %47 = vector.load %arg2[%c0_50, %c0_51, %c0_52, %c50] : memref<1x1x8x512xbf16, #tpu.memory_space<vmem>>, vector<1x1x8x384xbf16>
    %48 = vector.shape_cast %47 : vector<1x1x8x384xbf16> to vector<8x384xbf16>
    %c8 = arith.constant 8 : index
    %c0_53 = arith.constant 0 : index
    %c0_54 = arith.constant 0 : index
    %49 = vector.load %arg3[%c8, %c0_53, %c0_54] : memref<9x64x8xbf16, #tpu.memory_space<vmem>>, vector<1x64x8xbf16>
    %50 = vector.shape_cast %49 : vector<1x64x8xbf16> to vector<64x8xbf16>
    %cst_55 = arith.constant dense<0.000000e+00> : vector<64x384xf32>
    %51 = tpu.matmul %50, %48, %cst_55 {dimension_numbers = #tpu.dot_dimension_numbers<[1], [0], [0], [1], [0, 0, 1, 1], [], []>} : vector<64x8xbf16>, vector<8x384xbf16>, vector<64x384xf32> -> vector<64x384xf32>
    %52 = arith.addf %46, %51 : vector<64x384xf32>
    %c0_56 = arith.constant 0 : index
    %c0_57 = arith.constant 0 : index
    %53 = vector.load %arg4[%c0_56, %c0_57] : memref<64x1xf32, #tpu.memory_space<vmem>>, vector<64x1xf32>
    %54 = vector.broadcast %53 : vector<64x1xf32> to vector<64x384xf32>
    %55 = arith.mulf %52, %54 : vector<64x384xf32>
    %c0_58 = arith.constant 0 : index
    %c0_59 = arith.constant 0 : index
    %56 = vector.load %arg5[%c0_58, %c0_59] : memref<64x1xf32, #tpu.memory_space<vmem>>, vector<64x1xf32>
    %57 = vector.broadcast %56 : vector<64x1xf32> to vector<64x384xf32>
    %58 = arith.addf %55, %57 : vector<64x384xf32>
    %cst_60 = arith.constant 0.000000e+00 : f32
    %59 = vector.broadcast %cst_60 : f32 to vector<64x384xf32>
    %60 = arith.maximumf %58, %59 : vector<64x384xf32>
    %61 = arith.truncf %60 : vector<64x384xf32> to vector<64x384xbf16>
    %c0_61 = arith.constant 0 : index
    %c0_62 = arith.constant 0 : index
    %62 = vector.load %arg6[%c0_61, %c0_62] : memref<3x32xbf16, #tpu.memory_space<vmem>>, vector<3x32xbf16>
    %63 = vector.extract_strided_slice %61 {offsets = [0, 0], sizes = [32, 384], strides = [1, 1]} : vector<64x384xbf16> to vector<32x384xbf16>
    %cst_63 = arith.constant dense<0.000000e+00> : vector<3x384xf32>
    %64 = tpu.matmul %62, %63, %cst_63 {dimension_numbers = #tpu.dot_dimension_numbers<[1], [0], [0], [1], [0, 0, 1, 1], [], []>} : vector<3x32xbf16>, vector<32x384xbf16>, vector<3x384xf32> -> vector<3x384xf32>
    %c0_64 = arith.constant 0 : index
    %c0_65 = arith.constant 0 : index
    %65 = vector.load %arg7[%c0_64, %c0_65] : memref<3x1xf32, #tpu.memory_space<vmem>>, vector<3x1xf32>
    %66 = vector.broadcast %65 : vector<3x1xf32> to vector<3x384xf32>
    %67 = arith.addf %64, %66 : vector<3x384xf32>
    %c0_66 = arith.constant 0 : index
    %c0_67 = arith.constant 0 : index
    %68 = vector.load %arg8[%c0_66, %c0_67] : memref<24x32xbf16, #tpu.memory_space<vmem>>, vector<24x32xbf16>
    %69 = vector.extract_strided_slice %61 {offsets = [32, 0], sizes = [32, 384], strides = [1, 1]} : vector<64x384xbf16> to vector<32x384xbf16>
    %cst_68 = arith.constant dense<0.000000e+00> : vector<24x384xf32>
    %70 = tpu.matmul %68, %69, %cst_68 {dimension_numbers = #tpu.dot_dimension_numbers<[1], [0], [0], [1], [0, 0, 1, 1], [], []>} : vector<24x32xbf16>, vector<32x384xbf16>, vector<24x384xf32> -> vector<24x384xf32>
    %c0_69 = arith.constant 0 : index
    %c0_70 = arith.constant 0 : index
    %71 = vector.load %arg9[%c0_69, %c0_70] : memref<24x1xf32, #tpu.memory_space<vmem>>, vector<24x1xf32>
    %72 = vector.broadcast %71 : vector<24x1xf32> to vector<24x384xf32>
    %73 = arith.addf %70, %72 : vector<24x384xf32>
    %74 = arith.negf %67 : vector<3x384xf32>
    %75 = math.exp %74 : vector<3x384xf32>
    %cst_71 = arith.constant 1.000000e+00 : f32
    %76 = vector.broadcast %cst_71 : f32 to vector<3x384xf32>
    %77 = arith.addf %76, %75 : vector<3x384xf32>
    %78 = arith.divf %76, %77 : vector<3x384xf32>
    %79 = tpu.iota {dimensions = array<i32: 0>} : vector<24x1xi32>
    %c3_i32 = arith.constant 3 : i32
    %80 = vector.broadcast %c3_i32 : i32 to vector<24x1xi32>
    %81 = arith.cmpi sge, %79, %80 : vector<24x1xi32>
    %c6_i32 = arith.constant 6 : i32
    %82 = vector.broadcast %c6_i32 : i32 to vector<24x1xi32>
    %83 = arith.cmpi slt, %79, %82 : vector<24x1xi32>
    %84 = arith.andi %81, %83 : vector<24x1xi1>
    %c6_i32_72 = arith.constant 6 : i32
    %85 = vector.broadcast %c6_i32_72 : i32 to vector<24x1xi32>
    %86 = arith.cmpi sge, %79, %85 : vector<24x1xi32>
    %c8_i32 = arith.constant 8 : i32
    %87 = vector.broadcast %c8_i32 : i32 to vector<24x1xi32>
    %88 = arith.cmpi slt, %79, %87 : vector<24x1xi32>
    %89 = arith.andi %86, %88 : vector<24x1xi1>
    %90 = arith.negf %73 : vector<24x384xf32>
    %91 = math.exp %90 : vector<24x384xf32>
    %cst_73 = arith.constant 1.000000e+00 : f32
    %92 = vector.broadcast %cst_73 : f32 to vector<24x384xf32>
    %93 = arith.addf %92, %91 : vector<24x384xf32>
    %94 = arith.divf %92, %93 : vector<24x384xf32>
    %cst_74 = arith.constant 5.000000e-01 : f32
    %95 = vector.broadcast %cst_74 : f32 to vector<24x384xf32>
    %96 = arith.subf %94, %95 : vector<24x384xf32>
    %97 = arith.mulf %73, %73 : vector<24x384xf32>
    %cst_75 = arith.constant 0.000000e+00 : f32
    %98 = vector.shape_cast %89 : vector<24x1xi1> to vector<24x1xi1>
    %99 = vector.broadcast %98 : vector<24x1xi1> to vector<24x384xi1>
    %100 = vector.broadcast %cst_75 : f32 to vector<24x384xf32>
    %101 = arith.select %99, %97, %100 : vector<24x384xi1>, vector<24x384xf32>
    %cst_76 = arith.constant dense<0.000000e+00> : vector<384xf32>
    %102 = vector.multi_reduction <add>, %101, %cst_76 [0] : vector<24x384xf32> to vector<384xf32>
    %103 = vector.shape_cast %102 : vector<384xf32> to vector<1x384xf32>
    %cst_77 = arith.constant 1.000000e-24 : f32
    %104 = vector.broadcast %cst_77 : f32 to vector<1x384xf32>
    %105 = arith.maximumf %103, %104 : vector<1x384xf32>
    %106 = math.rsqrt %105 : vector<1x384xf32>
    %107 = vector.broadcast %106 : vector<1x384xf32> to vector<24x384xf32>
    %108 = arith.mulf %73, %107 : vector<24x384xf32>
    %109 = vector.shape_cast %89 : vector<24x1xi1> to vector<24x1xi1>
    %110 = vector.broadcast %109 : vector<24x1xi1> to vector<24x384xi1>
    %111 = arith.select %110, %108, %73 : vector<24x384xi1>, vector<24x384xf32>
    %112 = vector.shape_cast %84 : vector<24x1xi1> to vector<24x1xi1>
    %113 = vector.broadcast %112 : vector<24x1xi1> to vector<24x384xi1>
    %114 = arith.select %113, %96, %111 : vector<24x384xi1>, vector<24x384xf32>
    %c0_78 = arith.constant 0 : index
    %c0_79 = arith.constant 0 : index
    %c0_80 = arith.constant 0 : index
    %115 = vector.load %arg10[%c0_78, %c0_79, %c0_80] : memref<1x3x384xf32, #tpu.memory_space<vmem>>, vector<1x3x384xf32>
    %116 = vector.shape_cast %115 : vector<1x3x384xf32> to vector<3x384xf32>
    %117 = vector.shape_cast %78 : vector<3x384xf32> to vector<1x3x384xf32>
    tpu.vector_store %arg10[%c0_78, %c0_79, %c0_80], %117 {strides = array<i32>} : memref<1x3x384xf32, #tpu.memory_space<vmem>>, vector<1x3x384xf32>,
    %c0_81 = arith.constant 0 : index
    %c0_82 = arith.constant 0 : index
    %c0_83 = arith.constant 0 : index
    %118 = vector.load %arg11[%c0_81, %c0_82, %c0_83] : memref<1x24x384xf32, #tpu.memory_space<vmem>>, vector<1x24x384xf32>
    %119 = vector.shape_cast %118 : vector<1x24x384xf32> to vector<24x384xf32>
    %120 = vector.shape_cast %114 : vector<24x384xf32> to vector<1x24x384xf32>
    tpu.vector_store %arg11[%c0_81, %c0_82, %c0_83], %120 {strides = array<i32>} : memref<1x24x384xf32, #tpu.memory_space<vmem>>, vector<1x24x384xf32>,
    return
  }
  func.func @transform_0(%arg0: i32, %arg1: i32) -> (i32, i32, i32, i32) {
    %c0_i32 = arith.constant 0 : i32
    %c0_i32_0 = arith.constant 0 : i32
    %c0_i32_1 = arith.constant 0 : i32
    return %arg0, %arg1, %c0_i32, %c0_i32_0 : i32, i32, i32, i32
  }
  func.func @transform_1(%arg0: i32, %arg1: i32) -> (i32, i32, i32) {
    %c0_i32 = arith.constant 0 : i32
    %c0_i32_0 = arith.constant 0 : i32
    %c0_i32_1 = arith.constant 0 : i32
    %c0_i32_2 = arith.constant 0 : i32
    return %c0_i32, %c0_i32_0, %c0_i32_1 : i32, i32, i32
  }
  func.func @transform_2(%arg0: i32, %arg1: i32) -> (i32, i32) {
    %c0_i32 = arith.constant 0 : i32
    %c0_i32_0 = arith.constant 0 : i32
    %c0_i32_1 = arith.constant 0 : i32
    return %c0_i32, %c0_i32_0 : i32, i32
  }
  func.func @transform_3(%arg0: i32, %arg1: i32) -> (i32, i32) {
    %c0_i32 = arith.constant 0 : i32
    %c0_i32_0 = arith.constant 0 : i32
    %c0_i32_1 = arith.constant 0 : i32
    return %c0_i32, %c0_i32_0 : i32, i32
  }
  func.func @transform_4(%arg0: i32, %arg1: i32) -> (i32, i32) {
    %c0_i32 = arith.constant 0 : i32
    %c0_i32_0 = arith.constant 0 : i32
    %c0_i32_1 = arith.constant 0 : i32
    return %c0_i32, %c0_i32_0 : i32, i32
  }
  func.func @transform_5(%arg0: i32, %arg1: i32) -> (i32, i32) {
    %c0_i32 = arith.constant 0 : i32
    %c0_i32_0 = arith.constant 0 : i32
    %c0_i32_1 = arith.constant 0 : i32
    return %c0_i32, %c0_i32_0 : i32, i32
  }
  func.func @transform_6(%arg0: i32, %arg1: i32) -> (i32, i32) {
    %c0_i32 = arith.constant 0 : i32
    %c0_i32_0 = arith.constant 0 : i32
    %c0_i32_1 = arith.constant 0 : i32
    return %c0_i32, %c0_i32_0 : i32, i32
  }
  func.func @transform_7(%arg0: i32, %arg1: i32) -> (i32, i32) {
    %c0_i32 = arith.constant 0 : i32
    %c0_i32_0 = arith.constant 0 : i32
    %c0_i32_1 = arith.constant 0 : i32
    return %c0_i32, %c0_i32_0 : i32, i32
  }
  func.func @transform_8(%arg0: i32, %arg1: i32) -> (i32, i32, i32) {
    %c0_i32 = arith.constant 0 : i32
    %c0_i32_0 = arith.constant 0 : i32
    return %arg0, %c0_i32, %arg1 : i32, i32, i32
  }
  func.func @transform_9(%arg0: i32, %arg1: i32) -> (i32, i32, i32) {
    %c0_i32 = arith.constant 0 : i32
    %c0_i32_0 = arith.constant 0 : i32
    return %arg0, %c0_i32, %arg1 : i32, i32, i32
  }
}

</mosaic_0001>

<bundles_post_ra>
// kernel: tpu_custom_call.1
= control target key start
LH: loop header
LB: loop body
LE: loop exit
PB: predicated region body
PF: predicated region fallthrough
CT: control target
= control target key end

     0   :  { %15 = vsyncpa [#allocation3], 0  ;;  %s4735_s0 = inlined_call_operand.vmem [shape: bf16[2,1,8,512], index: 0, kind: input, shape index: {}]   ;;  %s4736_s1 = inlined_call_operand.vmem [shape: bf16[9,64,8], index: 1, kind: input, shape index: {}]   ;;  %s4737_s2 = inlined_call_operand.vmem [shape: f32[64,1], index: 2, kind: input, shape index: {}]   ;;  %s4738_s3 = inlined_call_operand.vmem [shape: f32[64,1], index: 3, kind: input, shape index: {}]   ;;  %s4739_s4 = inlined_call_operand.vmem [shape: bf16[3,32], index: 4, kind: input, shape index: {}]   ;;  %s4740_s5 = inlined_call_operand.vmem [shape: f32[3,1], index: 5, kind: input, shape index: {}]   ;;  %s4741_s6 = inlined_call_operand.vmem [shape: bf16[24,32], index: 6, kind: input, shape index: {}]   ;;  %s4742_s7 = inlined_call_operand.vmem [shape: f32[24,1], index: 7, kind: input, shape index: {}]   ;;  %s4743_s8 = inlined_call_operand.vmem [shape: f32[2,3,384], index: 8, kind: output, shape index: {0}]   ;;  %s4744_s9 = inlined_call_operand.hbm [shape: f32[2,24,384], index: 9, kind: output, shape index: {1}]  }
   0x1   :  { %17 = vsyncpa [#allocation3 + $0x1], 0  ;;  %s3475_s30 = smov 0   ;;  %s3477_s10 = smov 0  }
   0x2   :  { %s3479_s11 = smov 0   ;;  %s3481_s12 = smov 0  }
   0x3   :  { %s3483_s13 = smov 0   ;;  %s3485_s14 = smov 0  }
   0x4 LB: > { %s2831_s15 = sadd.s32 4294967295, %s3412_s14   ;;  %s2832_s16 = sadd.s32 4294967294, %s3412_s14   ;;  %s3412_s14 = sphi %s3485_s14, %s23_s14   ;;  %s3408_s13 = sphi %s3483_s13, %s4759_s13   ;;  %s3404_s12 = sphi %s3481_s12, %s4758_s12   ;;  %s3400_s11 = sphi %s3479_s11, %s4757_s11   ;;  %s3396_s10 = sphi %s3477_s10, %s4756_s10   ;;  %s3392_s30 = sphi %s3475_s30, %s4755_s30  }
   0x5   : > { %s35_s17 = sadd.s32 1, %s3408_s13  ;;  %s247_s18 = sadd.s32 1, %s3400_s11 }
   0x6   : > { %p37_p0 = scmp.ge.s32.totalorder %s35_s17, 2  ;;  %p257_p1 = scmp.ne.s32.totalorder %s3400_s11, %s3396_s10 }
   0x7   : > { %p258_p2 = scmp.eq.s32.totalorder %s2831_s15, 1  ;;  %p263_p3 = scmp.ne.s32.totalorder %s3396_s10, %s3392_s30 }
   0x8   : > { %s4761_s17 = smov (%p37_p0, %s35_s17), 0  ;;  %p264_p5 = scmp.eq.s32.totalorder %s2832_s16, 1 }
   0x9   : > { %p3515_p4 = por %p258_p2, %p257_p1  ;;  %s242_s20 = ssub.s32 %s3408_s13, %s4761_s17 }
   0xa   : > { %p2835_p6 = scmp.ge.s32.totalorder %s3412_s14, 1  ;;  %p245_p7 = scmp.eq.s32.totalorder %s242_s20, 0 }
   0xb   : > { %p3522_p8 = por %p264_p5, %p263_p3  ;;  %p315_p9 = scmp.lt.s32.totalorder %s3412_s14, 3 }
   0xc   : > { %s3528_s22 = scalar_select %p245_p7, %s3400_s11, %s247_s18  }
   0xd   : > { %p316_p10 = pnand %p2835_p6, %p315_p9 }
   0xe   : > { %p364_p11 = scmp.lt.s32.totalorder (!%p316_p10), %s3404_s12, 1  ;;  %s3414_s28 = smov (!%p316_p10), 127  }
   0xf   : > { %319 = sbr.rel (%p316_p10) target bundleno = 938 (0x3aa), region = 52  ;;  %s3415_s29 = smov (!%p316_p10), 126  }
  0x10   : > { %s3416_s15 = smov (!%p316_p10), 104   ;;  %s3417_s16 = smov (!%p316_p10), 103  }
  0x11   : > { %s3418_s18 = smov (!%p316_p10), 102   ;;  %s3420_s25 = smov (!%p316_p10), 79  }
  0x14   : > { %s3532_s23 = scalar_select %p364_p11, %s3404_s12, 1  ;;  %vm461_vm0 = vcmask 1043456   ;;  %v3575_v11 = vld [vmem:[%s4736_s1] sm:$0xff]  ;;  %vm448_vm1 = vcmask 64512   ;;  %v3582_v12 = vld [vmem:[%s4736_s1 + $0x8] sm:$0xff]  ;;  %v3589_v15 = vld [vmem:[%s4736_s1 + $0x10] sm:$0xff] }
  0x15   : > { %vm444_vm2 = vcmask 1039360   ;;  %v3197_v24 = vld [vmem:[%s4736_s1 + $0x20] sm:$0xff]  ;;  %v3607_v25 = vld [vmem:[%s4736_s1 + $0x18] sm:$0xff]  ;;  %v3198_v27 = vld [vmem:[%s4736_s1 + $0x28] sm:$0xff]  ;;  %vm731_vm3 = vcmask 1031168   ;;  %vm904_vm4 = vcmask 850944  }
  0x16   : > { %s3192_s24 = sshll.u32 %s3532_s23, 4  ;;  %v3630_v39 = vld [vmem:[%s4736_s1 + $0x40] sm:$0xff]  ;;  %v3199_v40 = vld [vmem:[%s4736_s1 + $0x30] sm:$0xff]  ;;  %v3643_v41 = vld [vmem:[%s4736_s1 + $0x48] sm:$0xff]  ;;  %vm1077_vm5 = vcmask 842752   ;;  %vm1250_vm6 = vcmask 834560  }
  0x17   : > { %s3538_s27 = scalar_lea.vmem %s4735_s0, %s3192_s24  ;;  %v3200_v42 = vld [vmem:[%s4736_s1 + $0x38] sm:$0xff]  ;;  %v3658_v43 = vld [vmem:[%s4736_s1 + $0x50] sm:$0xff]  ;;  %v3205_v59 = vld [vmem:[%s4736_s1 + $0x60] sm:$0xff]  ;;  %vm1423_vm7 = vcmask 654336   ;;  %vm1596_vm8 = vcmask 646144   ;;  %vm1769_vm9 = vcmask 637952  }
  0x18   : > { %v396_v0 = vld [vmem:[%s3538_s27 + $0x8] sm:$0xff]  ;;  %v395_v1 = vld [vmem:[%s3538_s27] sm:$0xff]  ;;  %v3679_v48 = vld [vmem:[%s4736_s1 + $0x58] sm:$0xff]  ;;  %vm2128_vm10 = vcmask 261120  }
  0x19   : > { %v430_v2 = vunpack.c.l.b16 %v396_v0  ;;  %v428_v3 = vunpack.c.l.b16 %v395_v1  ;;  %v431_v6 = vunpack.c.h.b16 %v396_v0  ;;  %v429_v7 = vunpack.c.h.b16 %v395_v1  ;;  %v386_v31 = vld [vmem:[%s3538_s27 + $0x8] sm:$0xf]  ;;  %v3207_v1 = vld [vmem:[%s4736_s1 + $0x70] sm:$0xff] }
  0x1a   : > { %v582_v32 = vunpack.c.l.b16 %v386_v31  ;;  %v3206_v62 = vld [vmem:[%s4736_s1 + $0x68] sm:$0xff] }
  0x1b   : > { %v3542_v4 = vpack.c.b16 %v430_v2, %v430_v2  ;;  %v3544_v5 = vpack.c.b16 %v428_v3, %v428_v3  ;;  %v3549_v8 = vpack.c.b16 %v431_v6, %v431_v6  ;;  %v3551_v9 = vpack.c.b16 %v429_v7, %v429_v7 }
  0x1c   : > { %v585_v37 = vpack.c.b16 %v582_v32, %v582_v32 }
  0x1d   : > { %440 = vrot.lane.b32.xlu1 %v3542_v4, %s3414_s28  ;;  %436 = vrot.lane.b32.xlu0 %v3544_v5, %s3414_s28  ;;  %v599_v10 = vsel %vm461_vm0, %v3544_v5, 0  ;;  %v602_v30 = vsel %vm461_vm0, %v3551_v9, 0 }
  0x1e   : > { %723 = vrot.lane.b32.xlu2 %v3544_v5, %s3415_s29  ;;  %614 = vmatpush.bf16.msra.mxu3 %v599_v10  ;;  %v605_v38 = vsel %vm461_vm0, %v585_v37, 0 }
  0x21   : > { %2891 = vmatmul.msk.bf16.vlgmr.msra.gmra.mxu3 %vm448_vm1, %v3575_v11 }
  0x25   : > { %442 = vrot.lane.b32.xlu1 %v3549_v8, %s3414_s28  ;;  %438 = vrot.lane.b32.xlu0 %v3551_v9, %s3414_s28 }
  0x26   : > { %725 = vrot.lane.b32.xlu2 %v3551_v9, %s3415_s29 }
  0x2d   : > { %727 = vrot.lane.b32.xlu0 %v3542_v4, %s3415_s29  ;;  %729 = vrot.lane.b32.xlu1 %v3549_v8, %s3415_s29  ;;  %s3421_s29 = smov 78  }
  0x2e   : > { %896 = vrot.lane.b32.xlu2 %v3544_v5, %s3416_s15 }
  0x31   : > { %2892 = vmatmul.msk.bf16.gmra.mxu3 %vm448_vm1, %v3582_v12 }
  0x35   : > { %900 = vrot.lane.b32.xlu1 %v3542_v4, %s3416_s15  ;;  %898 = vrot.lane.b32.xlu0 %v3551_v9, %s3416_s15 }
  0x36   : > { %1069 = vrot.lane.b32.xlu2 %v3544_v5, %s3417_s16 }
  0x3d   : > { %1073 = vrot.lane.b32.xlu1 %v3542_v4, %s3417_s16  ;;  %1071 = vrot.lane.b32.xlu0 %v3551_v9, %s3417_s16 }
  0x3e   : > { %902 = vrot.lane.b32.xlu2 %v3549_v8, %s3416_s15 }
  0x41   : > { %2893 = vmatmul.msk.bf16.gmra.mxu3 %vm448_vm1, %v3589_v15 }
  0x45   : > { %1075 = vrot.lane.b32.xlu0 %v3549_v8, %s3417_s16  ;;  %1244 = vrot.lane.b32.xlu1 %v3551_v9, %s3418_s18  ;;  %s3234_s16 = smul.u32 72, %s3404_s12 }
  0x46   : > { %1246 = vrot.lane.b32.xlu2 %v3542_v4, %s3418_s18 }
  0x47   : > { %s2708_s24 = scalar_lea.hbm %s4744_s9, %s3234_s16 }
  0x4d   : > { %1248 = vrot.lane.b32.xlu0 %v3549_v8, %s3418_s18  ;;  %1242 = vrot.lane.b32.xlu1 %v3544_v5, %s3418_s18  ;;  %s3419_s18 = smov 80  }
  0x4e   : > { %1415 = vrot.lane.b32.xlu2 %v3544_v5, %s3419_s18 }
  0x51   : > { %2894 = vmatmul.msk.bf16.gmra.mxu3 %vm448_vm1, %v3607_v25 }
  0x55   : > { %1419 = vrot.lane.b32.xlu1 %v3542_v4, %s3419_s18  ;;  %1417 = vrot.lane.b32.xlu0 %v3551_v9, %s3419_s18 }
  0x56   : > { %1421 = vrot.lane.b32.xlu2 %v3549_v8, %s3419_s18  ;;  %s3354_s18 = scalar_lea.hbm %s4744_s9, 144 }
  0x5d   : > { %1588 = vrot.lane.b32.xlu0 %v3544_v5, %s3420_s25  ;;  %1590 = vrot.lane.b32.xlu1 %v3551_v9, %s3420_s25 }
  0x5e   : > { %1592 = vrot.lane.b32.xlu2 %v3542_v4, %s3420_s25 }
  0x65   : > { %1761 = vrot.lane.b32.xlu0 %v3544_v5, %s3421_s29  ;;  %1763 = vrot.lane.b32.xlu1 %v3551_v9, %s3421_s29 }
  0x66   : > { %1765 = vrot.lane.b32.xlu2 %v3542_v4, %s3421_s29 }
  0x6d   : > { %1594 = vrot.lane.b32.xlu0 %v3549_v8, %s3420_s25  ;;  %1767 = vrot.lane.b32.xlu1 %v3549_v8, %s3421_s29  ;;  %s361_s25 = sand.u32 1, %s3396_s10   ;;  %s3233_s29 = smul.u32 12, %s3532_s23 }
  0x6e   : > { %s3232_s26 = smul.u32 72, %s361_s25 }
  0x6f   : > { %s4594_s15 = scalar_lea.vmem %s4743_s8, %s3233_s29  ;;  %s2691_s29 = scalar_lea.sflag [#allocation3], %s361_s25 }
  0x70   : > { %s4545_s28 = scalar_lea.vmem [#allocation2], %s3232_s26  ;;  %s2711_s26 = sshll.u32 %s2708_s24, 4  ;;  %s2712_s26 = int_to_ptr.hbm [resolvable:$true] %s2711_s26 }
  0x71   : > { %s2709_s12 = sshll.u32 %s4545_s28, 4  ;;  %s3348_s23 = sshra.s32 %s2712_s26, 4  ;;  %s2710_s12 = int_to_ptr.vmem [resolvable:$true] %s2709_s12  ;;  %s3349_s23 = int_to_ptr.hbm [resolvable:$true] %s3348_s23 }
  0x72   : > { %s3350_s27 = scalar_lea.hbm %s3349_s23, 72  ;;  %p3355_p1 = scmp.lt.s32.totalorder %s3349_s23, %s4744_s9 }
  0x73   : > { %p3351_p12 = scmp.ne.s32.totalorder %s3349_s23, %s3350_s27  ;;  %p3356_p2 = scmp.lt.s32.totalorder %s3354_s18, %s3350_s27 }
  0x75   : > { %p3352_p13 = pnand %p3351_p12, %p3515_p4  ;;  %p3357_p3 = por %p3356_p2, %p3355_p1 }
  0x77   : > { %p3353_p0 = pneg %p3352_p13 }
  0x78   : > { %v724_v26 = vpop.permute.xlu2 %723 }
  0x79   : > { %p3358_p5 = pnand %p3357_p3, %p3353_p0 }
  0x80   : > { %v726_v28 = vpop.permute.xlu2 %725 }
  0x81   : > { %v732_v34 = vsel %vm731_vm3, %v724_v26, %v726_v28 }
  0x82   : > { %v748_v36 = vsel %vm461_vm0, %v732_v34, 0 }
  0x88   : > { %v897_v44 = vpop.permute.xlu2 %896 }
  0x8f   : > { %v441_v13 = vpop.permute.xlu1 %440  ;;  %v437_v14 = vpop.permute.xlu0 %436 }
  0x90   : > { %v1070_v49 = vpop.permute.xlu2 %1069 }
  0x97   : > { %v443_v16 = vpop.permute.xlu1 %442  ;;  %v439_v17 = vpop.permute.xlu0 %438 }
  0x98   : > { %v445_v18 = vsel %vm444_vm2, %v437_v14, %v439_v17  ;;  %v446_v19 = vsel %vm444_vm2, %v439_v17, %v441_v13  ;;  %v447_v20 = vsel %vm444_vm2, %v441_v13, %v443_v16  ;;  %v903_v51 = vpop.permute.xlu2 %902 }
  0x99   : > { %v463_v21 = vsel %vm461_vm0, %v445_v18, 0  ;;  %v466_v22 = vsel %vm461_vm0, %v446_v19, 0  ;;  %v469_v23 = vsel %vm461_vm0, %v447_v20, 0 }
  0x9a   : > { %478 = vmatpush.bf16.msra.mxu0 %v463_v21  ;;  %507 = vmatpush.bf16.msra.mxu1 %v466_v22 }
  0x9b   : > { %536 = vmatpush.bf16.msra.mxu2 %v469_v23 }
  0x9d   : > { %2863 = vmatmul.msk.bf16.vlgmr.msra.gmra.mxu0 %vm448_vm1, %v3197_v24  ;;  %2867 = vmatmul.msk.bf16.vlgmr.msra.gmra.mxu1 %vm448_vm1, %v3197_v24 }
  0x9e   : > { %2871 = vmatmul.msk.bf16.vlgmr.msra.gmra.mxu2 %vm448_vm1, %v3197_v24  ;;  %643 = vmatpush.bf16.msrb.mxu0 %v602_v30 }
  0x9f   : > { %v728_v29 = vpop.permute.xlu0 %727  ;;  %763 = vmatpush.bf16.msrb.mxu2 %v748_v36  ;;  %672 = vmatpush.bf16.msrb.mxu1 %v605_v38  ;;  %v730_v45 = vpop.permute.xlu1 %729 }
  0xa0   : > { %v733_v33 = vsel %vm731_vm3, %v726_v28, %v728_v29  ;;  %v734_v46 = vsel %vm731_vm3, %v728_v29, %v730_v45 }
  0xa1   : > { %v751_v35 = vsel %vm461_vm0, %v733_v33, 0  ;;  %v754_v47 = vsel %vm461_vm0, %v734_v46, 0 }
  0xa2   : > { %792 = vmatpush.bf16.msrb.mxu3 %v751_v35  ;;  %821 = vmatpush.bf16.msra.mxu0 %v754_v47  ;;  %v3764_v35 = vld [vmem:[%s4736_s1 + $0xa0] sm:$0xff]  ;;  %v3787_v47 = vld [vmem:[%s4736_s1 + $0xa8] sm:$0xff] }
  0xa4   : > { %v616_v60 = vpop.f32.mrf.mxu3 }
  0xa5   : > { %2931 = vmatmul.msk.bf16.vlgmr.msrb.gmra.mxu3 %vm448_vm1, %v3630_v39 }
  0xa7   : > { %v901_v50 = vpop.permute.xlu1 %900  ;;  %v899_v53 = vpop.permute.xlu0 %898 }
  0xa8   : > { %v907_v52 = vsel %vm904_vm4, %v901_v50, %v903_v51  ;;  %v905_v55 = vsel %vm904_vm4, %v897_v44, %v899_v53  ;;  %v906_v56 = vsel %vm904_vm4, %v899_v53, %v901_v50 }
  0xa9   : > { %v927_v54 = vsel %vm461_vm0, %v907_v52, 0  ;;  %v921_v57 = vsel %vm461_vm0, %v905_v55, 0  ;;  %v924_v58 = vsel %vm461_vm0, %v906_v56, 0 }
  0xaa   : > { %994 = vmatpush.bf16.msra.mxu3 %v927_v54  ;;  %936 = vmatpush.bf16.msra.mxu1 %v921_v57 }
  0xab   : > { %965 = vmatpush.bf16.msra.mxu2 %v924_v58  ;;  %v3810_v58 = vld [vmem:[%s4736_s1 + $0xb0] sm:$0xff] }
  0xac   : > { %v618_v61 = vpop.f32.mrf.mxu3 }
  0xad   : > { %2864 = vmatmul.msk.bf16.gmra.mxu0 %vm448_vm1, %v3198_v27  ;;  %2868 = vmatmul.msk.bf16.gmra.mxu1 %vm448_vm1, %v3198_v27 }
  0xae   : > { %2872 = vmatmul.msk.bf16.gmra.mxu2 %vm448_vm1, %v3198_v27 }
  0xaf   : > { %v1072_v19 = vpop.permute.xlu0 %1071 }
  0xb0   : > { %v1078_v20 = vsel %vm1077_vm5, %v1070_v49, %v1072_v19 }
  0xb1   : > { %v1094_v22 = vsel %vm461_vm0, %v1078_v20, 0 }
  0xb4   : > { %v621_v63 = vpop.f32.mrf.mxu3 }
  0xb5   : > { %2932 = vmatmul.msk.bf16.gmra.mxu3 %vm448_vm1, %v3643_v41 }
  0xb7   : > { %v1076_v31 = vpop.permute.xlu0 %1075 }
  0xbc   : > { %v623_v0 = vpop.f32.mrf.mxu3 }
  0xbd   : > { %2865 = vmatmul.msk.bf16.gmra.mxu0 %vm448_vm1, %v3199_v40  ;;  %2869 = vmatmul.msk.bf16.gmra.mxu1 %vm448_vm1, %v3199_v40 }
  0xbe   : > { %2873 = vmatmul.msk.bf16.gmra.mxu2 %vm448_vm1, %v3199_v40 }
  0xc4   : > { %v626_v5 = vpop.f32.mrf.mxu3 }
  0xc5   : > { %2933 = vmatmul.msk.bf16.gmra.mxu3 %vm448_vm1, %v3658_v43 }
  0xcc   : > { %v628_v10 = vpop.f32.mrf.mxu3 }
  0xcd   : > { %2866 = vmatmul.msk.bf16.gmra.mxu0 %vm448_vm1, %v3200_v42  ;;  %2870 = vmatmul.msk.bf16.gmra.mxu1 %vm448_vm1, %v3200_v42 }
  0xce   : > { %2874 = vmatmul.msk.bf16.gmra.mxu2 %vm448_vm1, %v3200_v42 }
  0xd4   : > { %v631_v17 = vpop.f32.mrf.mxu3 }
  0xd5   : > { %2934 = vmatmul.msk.bf16.gmra.mxu3 %vm448_vm1, %v3679_v48 }
  0xdc   : > { %v633_v28 = vpop.f32.mrf.mxu3 }
  0xdd   : > { %2895 = vmatmul.msk.bf16.vlgmr.msrb.gmra.mxu0 %vm448_vm1, %v3575_v11  ;;  %2899 = vmatmul.msk.bf16.vlgmr.msrb.gmra.mxu1 %vm448_vm1, %v3575_v11  ;;  %v1074_v11 = vpop.permute.xlu1 %1073 }
  0xde   : > { %2927 = vmatmul.msk.bf16.vlgmr.msrb.gmra.mxu2 %vm448_vm1, %v3630_v39  ;;  %v1079_v21 = vsel %vm1077_vm5, %v1072_v19, %v1074_v11  ;;  %1109 = vmatpush.bf16.msrb.mxu0 %v1094_v22  ;;  %v1080_v33 = vsel %vm1077_vm5, %v1074_v11, %v1076_v31  ;;  %v1249_v22 = vpop.permute.xlu0 %1248 }
  0xdf   : > { %v1097_v23 = vsel %vm461_vm0, %v1079_v21, 0  ;;  %v1100_v34 = vsel %vm461_vm0, %v1080_v33, 0 }
  0xe0   : > { %1138 = vmatpush.bf16.msrb.mxu1 %v1097_v23  ;;  %1167 = vmatpush.bf16.msrb.mxu2 %v1100_v34 }
  0xe5   : > { %2971 = vmatmul.msk.bf16.vlgmr.msra.gmra.mxu3 %vm448_vm1, %v3205_v59  ;;  %v3740_v18 = vpop.permute.xlu1 %1244 }
  0xed   : > { %2896 = vmatmul.msk.bf16.gmra.mxu0 %vm448_vm1, %v3582_v12  ;;  %2900 = vmatmul.msk.bf16.gmra.mxu1 %vm448_vm1, %v3582_v12  ;;  %v3208_v12 = vld [vmem:[%s4736_s1 + $0x78] sm:$0xff]  ;;  %v1243_v29 = vpop.permute.xlu1 %1242 }
  0xee   : > { %2928 = vmatmul.msk.bf16.gmra.mxu2 %vm448_vm1, %v3643_v41  ;;  %v1251_v30 = vsel %vm1250_vm6, %v1243_v29, %v3740_v18 }
  0xef   : > { %v1267_v32 = vsel %vm461_vm0, %v1251_v30, 0 }
  0xf0   : > { %1282 = vmatpush.bf16.msrb.mxu3 %v1267_v32 }
  0xf5   : > { %2972 = vmatmul.msk.bf16.gmra.mxu3 %vm448_vm1, %v3206_v62 }
  0xfd   : > { %2897 = vmatmul.msk.bf16.gmra.mxu0 %vm448_vm1, %v3589_v15  ;;  %2901 = vmatmul.msk.bf16.gmra.mxu1 %vm448_vm1, %v3589_v15 }
  0xfe   : > { %2929 = vmatmul.msk.bf16.gmra.mxu2 %vm448_vm1, %v3658_v43 }
 0x105   : > { %2973 = vmatmul.msk.bf16.gmra.mxu3 %vm448_vm1, %v3207_v1 }
 0x10d   : > { %2898 = vmatmul.msk.bf16.gmra.mxu0 %vm448_vm1, %v3607_v25  ;;  %2902 = vmatmul.msk.bf16.gmra.mxu1 %vm448_vm1, %v3607_v25 }
 0x10e   : > { %2930 = vmatmul.msk.bf16.gmra.mxu2 %vm448_vm1, %v3679_v48 }
 0x115   : > { %2974 = vmatmul.msk.bf16.gmra.mxu3 %vm448_vm1, %v3208_v12 }
 0x11a   : > { %v480_v2 = vpop.f32.mrf.mxu0  ;;  %v3715_v3 = vpop.f32.mrf.mxu1 }
 0x11b   : > { %v3718_v4 = vadd.f32 %v616_v60, %v480_v2 }
 0x11d   : > { %2935 = vmatmul.msk.bf16.vlgmr.msra.gmra.mxu0 %vm448_vm1, %v3630_v39  ;;  %2963 = vmatmul.msk.bf16.vlgmr.msra.gmra.mxu1 %vm448_vm1, %v3205_v59 }
 0x11e   : > { %2967 = vmatmul.msk.bf16.vlgmr.msra.gmra.mxu2 %vm448_vm1, %v3205_v59 }
 0x121   : > { %v3724_v6 = vpop.f32.mrf.mxu2 }
 0x122   : > { %v482_v7 = vpop.f32.mrf.mxu0  ;;  %v3726_v8 = vpop.f32.mrf.mxu1 }
 0x123   : > { %v3728_v9 = vadd.f32 %v618_v61, %v482_v7 }
 0x125   : > { %3035 = vmatmul.msk.bf16.vlgmr.msrb.gmra.mxu3 %vm448_vm1, %v3764_v35 }
 0x128   : > { %v794_v40 = vpop.f32.mrf.mxu3 }
 0x129   : > { %v3733_v13 = vpop.f32.mrf.mxu2 }
 0x12a   : > { %v485_v14 = vpop.f32.mrf.mxu0  ;;  %v3735_v15 = vpop.f32.mrf.mxu1 }
 0x12b   : > { %v3738_v16 = vadd.f32 %v621_v63, %v485_v14  ;;  %v3844_v14 = vld [vmem:[%s4736_s1 + $0xb8] sm:$0xff] }
 0x12d   : > { %2936 = vmatmul.msk.bf16.gmra.mxu0 %vm448_vm1, %v3643_v41  ;;  %2964 = vmatmul.msk.bf16.gmra.mxu1 %vm448_vm1, %v3206_v62 }
 0x12e   : > { %2968 = vmatmul.msk.bf16.gmra.mxu2 %vm448_vm1, %v3206_v62 }
 0x130   : > { %v796_v46 = vpop.f32.mrf.mxu3 }
 0x131   : > { %v3750_v24 = vpop.f32.mrf.mxu2 }
 0x132   : > { %v487_v25 = vpop.f32.mrf.mxu0  ;;  %v3752_v26 = vpop.f32.mrf.mxu1 }
 0x133   : > { %v3754_v27 = vadd.f32 %v623_v0, %v487_v25 }
 0x135   : > { %3036 = vmatmul.msk.bf16.gmra.mxu3 %vm448_vm1, %v3787_v47 }
 0x138   : > { %v799_v52 = vpop.f32.mrf.mxu3 }
 0x139   : > { %v3766_v36 = vpop.f32.mrf.mxu2 }
 0x13a   : > { %v490_v37 = vpop.f32.mrf.mxu0  ;;  %v3768_v38 = vpop.f32.mrf.mxu1 }
 0x13b   : > { %v3772_v39 = vadd.f32 %v626_v5, %v490_v37 }
 0x13d   : > { %2937 = vmatmul.msk.bf16.gmra.mxu0 %vm448_vm1, %v3658_v43  ;;  %2965 = vmatmul.msk.bf16.gmra.mxu1 %vm448_vm1, %v3207_v1 }
 0x13e   : > { %2969 = vmatmul.msk.bf16.gmra.mxu2 %vm448_vm1, %v3207_v1 }
 0x140   : > { %v801_v57 = vpop.f32.mrf.mxu3 }
 0x141   : > { %v3778_v41 = vpop.f32.mrf.mxu2 }
 0x142   : > { %v492_v42 = vpop.f32.mrf.mxu0  ;;  %v3780_v44 = vpop.f32.mrf.mxu1 }
 0x143   : > { %v3782_v45 = vadd.f32 %v628_v10, %v492_v42 }
 0x145   : > { %3037 = vmatmul.msk.bf16.gmra.mxu3 %vm448_vm1, %v3810_v58 }
 0x148   : > { %v3823_v0 = vpop.f32.mrf.mxu3 }
 0x149   : > { %v3789_v49 = vpop.f32.mrf.mxu2 }
 0x14a   : > { %v495_v43 = vpop.f32.mrf.mxu0  ;;  %v3791_v50 = vpop.f32.mrf.mxu1 }
 0x14b   : > { %v3795_v51 = vadd.f32 %v631_v17, %v495_v43 }
 0x14d   : > { %2938 = vmatmul.msk.bf16.gmra.mxu0 %vm448_vm1, %v3679_v48  ;;  %2966 = vmatmul.msk.bf16.gmra.mxu1 %vm448_vm1, %v3208_v12  ;;  %v3209_v48 = vld [vmem:[%s4736_s1 + $0x80] sm:$0xff] }
 0x14e   : > { %2970 = vmatmul.msk.bf16.gmra.mxu2 %vm448_vm1, %v3208_v12 }
 0x150   : > { %v3837_v11 = vpop.f32.mrf.mxu3 }
 0x151   : > { %v3801_v53 = vpop.f32.mrf.mxu2 }
 0x152   : > { %v497_v54 = vpop.f32.mrf.mxu0  ;;  %v3803_v55 = vpop.f32.mrf.mxu1 }
 0x153   : > { %v3805_v56 = vadd.f32 %v633_v28, %v497_v54 }
 0x155   : > { %3038 = vmatmul.msk.bf16.gmra.mxu3 %vm448_vm1, %v3844_v14 }
 0x158   : > { %v809_v23 = vpop.f32.mrf.mxu3 }
 0x159   : > { %v3812_v59 = vpop.f32.mrf.mxu2 }
 0x15a   : > { %v645_v60 = vpop.f32.mrf.mxu0  ;;  %v674_v61 = vpop.f32.mrf.mxu1 }
 0x15b   : > { %v646_v62 = vadd.f32 %v645_v60, %v3715_v3  ;;  %v3821_v63 = vadd.f32 %v674_v61, %v3724_v6  ;;  %v3211_v60 = vld [vmem:[%s4736_s1 + $0x90] sm:$0xff] }
 0x15d   : > { %v3825_v1 = vadd.f32 %v794_v40, %v646_v62  ;;  %2999 = vmatmul.msk.bf16.vlgmr.msrb.gmra.mxu0 %vm448_vm1, %v3209_v48  ;;  %3003 = vmatmul.msk.bf16.vlgmr.msrb.gmra.mxu1 %vm448_vm1, %v3209_v48  ;;  %v1418_v40 = vpop.permute.xlu0 %1417 }
 0x15e   : > { %3007 = vmatmul.msk.bf16.vlgmr.msrb.gmra.mxu2 %vm448_vm1, %v3209_v48 }
 0x161   : > { %v765_v2 = vpop.f32.mrf.mxu2 }
 0x162   : > { %v3831_v5 = vadd.f32 %v765_v2, %v3718_v4  ;;  %v647_v7 = vpop.f32.mrf.mxu0  ;;  %v676_v10 = vpop.f32.mrf.mxu1  ;;  %v3210_v4 = vld [vmem:[%s4736_s1 + $0x88] sm:$0xff] }
 0x163   : > { %v648_v3 = vadd.f32 %v647_v7, %v3726_v8  ;;  %v3835_v6 = vadd.f32 %v676_v10, %v3733_v13 }
 0x165   : > { %v3839_v12 = vadd.f32 %v796_v46, %v648_v3  ;;  %v811_v46 = vpop.f32.mrf.mxu3 }
 0x169   : > { %v767_v17 = vpop.f32.mrf.mxu2 }
 0x16a   : > { %v3850_v19 = vadd.f32 %v767_v17, %v3728_v9  ;;  %v650_v8 = vpop.f32.mrf.mxu0  ;;  %v679_v13 = vpop.f32.mrf.mxu1 }
 0x16b   : > { %v651_v20 = vadd.f32 %v650_v8, %v3735_v15  ;;  %v3856_v21 = vadd.f32 %v679_v13, %v3750_v24  ;;  %v1247_v9 = vpop.permute.xlu2 %1246 }
 0x16c   : > { %v1252_v28 = vsel %vm1250_vm6, %v3740_v18, %v1247_v9  ;;  %v1253_v29 = vsel %vm1250_vm6, %v1247_v9, %v1249_v22  ;;  %v3875_v18 = vpop.permute.xlu1 %1419 }
 0x16d   : > { %v3858_v25 = vadd.f32 %v799_v52, %v651_v20  ;;  %3000 = vmatmul.msk.bf16.gmra.mxu0 %vm448_vm1, %v3210_v4  ;;  %3004 = vmatmul.msk.bf16.gmra.mxu1 %vm448_vm1, %v3210_v4  ;;  %v1270_v15 = vsel %vm461_vm0, %v1252_v28, 0  ;;  %v1273_v24 = vsel %vm461_vm0, %v1253_v29, 0  ;;  %v1425_v42 = vsel %vm1423_vm7, %v1418_v40, %v3875_v18  ;;  %v996_v10 = vpop.f32.mrf.mxu3  ;;  %v3920_v20 = vld [vmem:[%s4736_s1 + $0xc8] sm:$0xff] }
 0x16e   : > { %3008 = vmatmul.msk.bf16.gmra.mxu2 %vm448_vm1, %v3210_v4  ;;  %1311 = vmatpush.bf16.msra.mxu0 %v1270_v15 }
 0x16f   : > { %1340 = vmatpush.bf16.msra.mxu1 %v1273_v24 }
 0x171   : > { %v770_v30 = vpop.f32.mrf.mxu2 }
 0x172   : > { %v3869_v31 = vadd.f32 %v770_v30, %v3738_v16  ;;  %v652_v32 = vpop.f32.mrf.mxu0  ;;  %v681_v33 = vpop.f32.mrf.mxu1  ;;  %v1443_v16 = vsel %vm461_vm0, %v1425_v42, 0 }
 0x173   : > { %v653_v34 = vadd.f32 %v652_v32, %v3752_v26  ;;  %v3873_v37 = vadd.f32 %v681_v33, %v3766_v36  ;;  %1484 = vmatpush.bf16.msra.mxu3 %v1443_v16  ;;  %v1416_v52 = vpop.permute.xlu2 %1415  ;;  %v3887_v36 = vld [vmem:[%s4736_s1 + $0xc0] sm:$0xff] }
 0x174   : > { %v1424_v54 = vsel %vm1423_vm7, %v1416_v52, %v1418_v40 }
 0x175   : > { %v3879_v43 = vadd.f32 %v801_v57, %v653_v34  ;;  %v1440_v26 = vsel %vm461_vm0, %v1424_v54, 0  ;;  %v998_v13 = vpop.f32.mrf.mxu3  ;;  %v3951_v34 = vld [vmem:[%s4736_s1 + $0xd0] sm:$0xff] }
 0x176   : > { %1455 = vmatpush.bf16.msra.mxu2 %v1440_v26  ;;  %3075 = vmatmul.msk.bf16.vlgmr.msra.gmra.mxu3 %vm448_vm1, %v3887_v36 }
 0x179   : > { %v772_v48 = vpop.f32.mrf.mxu2 }
 0x17a   : > { %v3893_v57 = vadd.f32 %v772_v48, %v3754_v27  ;;  %v655_v61 = vpop.f32.mrf.mxu0  ;;  %v684_v62 = vpop.f32.mrf.mxu1 }
 0x17b   : > { %v656_v2 = vadd.f32 %v655_v61, %v3768_v38  ;;  %v3899_v7 = vadd.f32 %v684_v62, %v3778_v41 }
 0x17d   : > { %v3902_v3 = vadd.f32 %v3823_v0, %v656_v2  ;;  %3001 = vmatmul.msk.bf16.gmra.mxu0 %vm448_vm1, %v3211_v60  ;;  %3005 = vmatmul.msk.bf16.gmra.mxu1 %vm448_vm1, %v3211_v60  ;;  %v1001_v15 = vpop.f32.mrf.mxu3 }
 0x17e   : > { %3009 = vmatmul.msk.bf16.gmra.mxu2 %vm448_vm1, %v3211_v60  ;;  %v1589_v60 = vpop.permute.xlu0 %1588 }
 0x181   : > { %v775_v27 = vpop.f32.mrf.mxu2 }
 0x182   : > { %v3908_v17 = vadd.f32 %v775_v27, %v3772_v39  ;;  %v657_v4 = vpop.f32.mrf.mxu0  ;;  %v686_v8 = vpop.f32.mrf.mxu1  ;;  %v3212_v39 = vld [vmem:[%s4736_s1 + $0x98] sm:$0xff] }
 0x183   : > { %v658_v38 = vadd.f32 %v657_v4, %v3780_v44  ;;  %v3912_v41 = vadd.f32 %v686_v8, %v3789_v49  ;;  %v1422_v4 = vpop.permute.xlu2 %1421 }
 0x185   : > { %v3915_v0 = vadd.f32 %v3837_v11, %v658_v38  ;;  %v1003_v33 = vpop.f32.mrf.mxu3  ;;  %v1426_v38 = vsel %vm1423_vm7, %v3875_v18, %v1422_v4 }
 0x186   : > { %3076 = vmatmul.msk.bf16.gmra.mxu3 %vm448_vm1, %v3920_v20  ;;  %v3993_v8 = vpop.permute.xlu0 %1761 }
 0x189   : > { %v777_v22 = vpop.f32.mrf.mxu2 }
 0x18a   : > { %v3926_v9 = vadd.f32 %v777_v22, %v3782_v45  ;;  %v660_v44 = vpop.f32.mrf.mxu0  ;;  %v689_v49 = vpop.f32.mrf.mxu1 }
 0x18b   : > { %v661_v11 = vadd.f32 %v660_v44, %v3791_v50  ;;  %v3932_v28 = vadd.f32 %v689_v49, %v3801_v53 }
 0x18d   : > { %v3934_v29 = vadd.f32 %v809_v23, %v661_v11  ;;  %3002 = vmatmul.msk.bf16.gmra.mxu0 %vm448_vm1, %v3212_v39  ;;  %3006 = vmatmul.msk.bf16.gmra.mxu1 %vm448_vm1, %v3212_v39  ;;  %v1593_v11 = vpop.permute.xlu2 %1592 }
 0x18e   : > { %3010 = vmatmul.msk.bf16.gmra.mxu2 %vm448_vm1, %v3212_v39 }
 0x191   : > { %v780_v45 = vpop.f32.mrf.mxu2 }
 0x192   : > { %v3940_v24 = vadd.f32 %v780_v45, %v3795_v51  ;;  %v662_v30 = vpop.f32.mrf.mxu0  ;;  %v691_v32 = vpop.f32.mrf.mxu1 }
 0x193   : > { %v663_v50 = vadd.f32 %v662_v30, %v3803_v55  ;;  %v3944_v53 = vadd.f32 %v691_v32, %v3812_v59  ;;  %v1595_v30 = vpop.permute.xlu0 %1594 }
 0x195   : > { %v3946_v23 = vadd.f32 %v811_v46, %v663_v50 }
 0x196   : > { %3077 = vmatmul.msk.bf16.gmra.mxu3 %vm448_vm1, %v3951_v34 }
 0x199   : > { %v782_v40 = vpop.f32.mrf.mxu2 }
 0x19a   : > { %v3954_v42 = vadd.f32 %v782_v40, %v3805_v56  ;;  %v823_v51 = vpop.f32.mrf.mxu0  ;;  %v938_v16 = vpop.f32.mrf.mxu1  ;;  %v1599_v40 = vsel %vm1596_vm8, %v1593_v11, %v1595_v30 }
 0x19b   : > { %v845_v55 = vadd.f32 %v823_v51, %v3821_v63  ;;  %v3960_v59 = vadd.f32 %v938_v16, %v3831_v5  ;;  %v1006_v56 = vpop.f32.mrf.mxu3  ;;  %v1619_v16 = vsel %vm461_vm0, %v1599_v40, 0 }
 0x19c   : > { %1686 = vmatpush.bf16.msrb.mxu3 %v1619_v16  ;;  %v3422_v16 = vmov 0  }
 0x19d   : > { %v3962_v46 = vadd.f32 %v996_v10, %v845_v55  ;;  %3039 = vmatmul.msk.bf16.vlgmr.msra.gmra.mxu0 %vm448_vm1, %v3764_v35  ;;  %3043 = vmatmul.msk.bf16.vlgmr.msra.gmra.mxu1 %vm448_vm1, %v3764_v35  ;;  %v3982_v35 = vld [vmem:[%s4736_s1 + $0xd8] sm:$0xff] }
 0x19e   : > { %3071 = vmatmul.msk.bf16.vlgmr.msra.gmra.mxu2 %vm448_vm1, %v3887_v36  ;;  %3303 = vset.pattern.permute.xlu1 %v3422_v16 }
 0x19f   : > { %3302 = vset.pattern.permute.xlu0 %v3422_v16  ;;  %3301 = vset.pattern.permute.xlu2 %v3422_v16 }
 0x1a1   : > { %v967_v52 = vpop.f32.mrf.mxu2 }
 0x1a2   : > { %v3971_v54 = vadd.f32 %v967_v52, %v3825_v1  ;;  %v825_v63 = vpop.f32.mrf.mxu0  ;;  %v940_v26 = vpop.f32.mrf.mxu1 }
 0x1a3   : > { %v848_v5 = vadd.f32 %v825_v63, %v3835_v6  ;;  %v3975_v48 = vadd.f32 %v940_v26, %v3850_v19  ;;  %v1008_v62 = vpop.f32.mrf.mxu3 }
 0x1a5   : > { %v3977_v61 = vadd.f32 %v998_v13, %v848_v5 }
 0x1a6   : > { %3078 = vmatmul.msk.bf16.gmra.mxu3 %vm448_vm1, %v3982_v35 }
 0x1a9   : > { %v969_v2 = vpop.f32.mrf.mxu2 }
 0x1aa   : > { %v3985_v1 = vadd.f32 %v969_v2, %v3839_v12  ;;  %v828_v10 = vpop.f32.mrf.mxu0  ;;  %v943_v27 = vpop.f32.mrf.mxu1  ;;  %v1446_v12 = vsel %vm461_vm0, %v1426_v38, 0 }
 0x1ab   : > { %v851_v6 = vadd.f32 %v828_v10, %v3856_v21  ;;  %v3991_v19 = vadd.f32 %v943_v27, %v3869_v31  ;;  %v1011_v21 = vpop.f32.mrf.mxu3  ;;  %1513 = vmatpush.bf16.msrb.mxu0 %v1446_v12 }
 0x1ad   : > { %v3997_v13 = vadd.f32 %v1001_v15, %v851_v6  ;;  %3040 = vmatmul.msk.bf16.gmra.mxu0 %vm448_vm1, %v3787_v47  ;;  %3044 = vmatmul.msk.bf16.gmra.mxu1 %vm448_vm1, %v3787_v47  ;;  %v1591_v47 = vpop.permute.xlu1 %1590 }
 0x1ae   : > { %3072 = vmatmul.msk.bf16.gmra.mxu2 %vm448_vm1, %v3920_v20  ;;  %v1597_v15 = vsel %vm1596_vm8, %v1589_v60, %v1591_v47  ;;  %v1598_v45 = vsel %vm1596_vm8, %v1591_v47, %v1593_v11 }
 0x1af   : > { %v1613_v50 = vsel %vm461_vm0, %v1597_v15, 0 }
 0x1b0   : > { %1628 = vmatpush.bf16.msrb.mxu1 %v1613_v50 }
 0x1b1   : > { %v972_v31 = vpop.f32.mrf.mxu2 }
 0x1b2   : > { %v4007_v22 = vadd.f32 %v972_v31, %v3858_v25  ;;  %v830_v18 = vpop.f32.mrf.mxu0  ;;  %v945_v39 = vpop.f32.mrf.mxu1  ;;  %v1616_v25 = vsel %vm461_vm0, %v1598_v45, 0 }
 0x1b3   : > { %v854_v44 = vadd.f32 %v830_v18, %v3873_v37  ;;  %v4011_v49 = vadd.f32 %v945_v39, %v3893_v57  ;;  %v1013_v51 = vpop.f32.mrf.mxu3  ;;  %1657 = vmatpush.bf16.msrb.mxu2 %v1616_v25  ;;  %v3221_v37 = vld [vmem:[%s4736_s1 + $0xe0] sm:$0xff] }
 0x1b5   : > { %v4013_v32 = vadd.f32 %v1003_v33, %v854_v44 }
 0x1b6   : > { %3115 = vmatmul.msk.bf16.vlgmr.msrb.gmra.mxu3 %vm448_vm1, %v3221_v37 }
 0x1b9   : > { %v974_v57 = vpop.f32.mrf.mxu2 }
 0x1ba   : > { %v4022_v55 = vadd.f32 %v974_v57, %v3879_v43  ;;  %v833_v33 = vpop.f32.mrf.mxu0  ;;  %v948_v52 = vpop.f32.mrf.mxu1 }
 0x1bb   : > { %v857_v63 = vadd.f32 %v833_v33, %v3899_v7  ;;  %v4027_v26 = vadd.f32 %v948_v52, %v3908_v17  ;;  %v1284_v43 = vpop.f32.mrf.mxu3 }
 0x1bd   : > { %v4029_v5 = vadd.f32 %v1006_v56, %v857_v63  ;;  %3041 = vmatmul.msk.bf16.gmra.mxu0 %vm448_vm1, %v3810_v58  ;;  %3045 = vmatmul.msk.bf16.gmra.mxu1 %vm448_vm1, %v3810_v58  ;;  %v3222_v58 = vld [vmem:[%s4736_s1 + $0xe8] sm:$0xff]  ;;  %v1764_v63 = vpop.permute.xlu1 %1763 }
 0x1be   : > { %3073 = vmatmul.msk.bf16.gmra.mxu2 %vm448_vm1, %v3951_v34 }
 0x1c1   : > { %v977_v60 = vpop.f32.mrf.mxu2 }
 0x1c2   : > { %v4038_v2 = vadd.f32 %v977_v60, %v3902_v3  ;;  %v835_v7 = vpop.f32.mrf.mxu0  ;;  %v950_v10 = vpop.f32.mrf.mxu1 }
 0x1c3   : > { %v860_v17 = vadd.f32 %v835_v7, %v3912_v41  ;;  %v4042_v56 = vadd.f32 %v950_v10, %v3926_v9  ;;  %v4049_v4 = vpop.f32.mrf.mxu3 }
 0x1c5   : > { %v4044_v27 = vadd.f32 %v1008_v62, %v860_v17 }
 0x1c6   : > { %3116 = vmatmul.msk.bf16.gmra.mxu3 %vm448_vm1, %v3222_v58 }
 0x1c9   : > { %v979_v6 = vpop.f32.mrf.mxu2 }
 0x1ca   : > { %v4052_v38 = vadd.f32 %v979_v6, %v3915_v0  ;;  %v838_v3 = vpop.f32.mrf.mxu0  ;;  %v953_v12 = vpop.f32.mrf.mxu1 }
 0x1cb   : > { %v863_v41 = vadd.f32 %v838_v3, %v3932_v28  ;;  %v4057_v9 = vadd.f32 %v953_v12, %v3940_v24  ;;  %v1289_v39 = vpop.f32.mrf.mxu3  ;;  %v1766_v3 = vpop.permute.xlu2 %1765 }
 0x1cc   : > { %v1771_v12 = vsel %vm1769_vm9, %v1764_v63, %v1766_v3 }
 0x1cd   : > { %v4059_v62 = vadd.f32 %v1011_v21, %v863_v41  ;;  %3042 = vmatmul.msk.bf16.gmra.mxu0 %vm448_vm1, %v3844_v14  ;;  %3046 = vmatmul.msk.bf16.gmra.mxu1 %vm448_vm1, %v3844_v14  ;;  %v4079_v14 = vld [vmem:[%s4736_s1 + $0xf0] sm:$0xff] }
 0x1ce   : > { %3074 = vmatmul.msk.bf16.gmra.mxu2 %vm448_vm1, %v3982_v35 }
 0x1d1   : > { %v982_v0 = vpop.f32.mrf.mxu2 }
 0x1d2   : > { %v4068_v31 = vadd.f32 %v982_v0, %v3934_v29  ;;  %v840_v18 = vpop.f32.mrf.mxu0  ;;  %v955_v28 = vpop.f32.mrf.mxu1  ;;  %v1789_v0 = vsel %vm461_vm0, %v1771_v12, 0 }
 0x1d3   : > { %v866_v24 = vadd.f32 %v840_v18, %v3944_v53  ;;  %v4072_v21 = vadd.f32 %v955_v28, %v3954_v42  ;;  %v4095_v30 = vpop.f32.mrf.mxu3  ;;  %1830 = vmatpush.bf16.msra.mxu1 %v1789_v0 }
 0x1d5   : > { %v4074_v44 = vadd.f32 %v1013_v51, %v866_v24 }
 0x1d6   : > { %3117 = vmatmul.msk.bf16.gmra.mxu3 %vm448_vm1, %v4079_v14 }
 0x1d9   : > { %v984_v47 = vpop.f32.mrf.mxu2 }
 0x1da   : > { %v4082_v11 = vadd.f32 %v984_v47, %v3946_v23  ;;  %v1111_v29 = vpop.f32.mrf.mxu0  ;;  %v1140_v15 = vpop.f32.mrf.mxu1 }
 0x1db   : > { %v1189_v53 = vadd.f32 %v1111_v29, %v3960_v59  ;;  %v4088_v42 = vadd.f32 %v1140_v15, %v3971_v54  ;;  %v1294_v51 = vpop.f32.mrf.mxu3 }
 0x1dd   : > { %v4090_v45 = vadd.f32 %v1284_v43, %v1189_v53  ;;  %3079 = vmatmul.msk.bf16.vlgmr.msrb.gmra.mxu0 %vm448_vm1, %v3887_v36  ;;  %3107 = vmatmul.msk.bf16.vlgmr.msrb.gmra.mxu1 %vm448_vm1, %v3221_v37  ;;  %v4110_v36 = vld [vmem:[%s4736_s1 + $0xf8] sm:$0xff]  ;;  %v1770_v43 = vsel %vm1769_vm9, %v3993_v8, %v1764_v63 }
 0x1de   : > { %3111 = vmatmul.msk.bf16.vlgmr.msrb.gmra.mxu2 %vm448_vm1, %v3221_v37 }
 0x1e1   : > { %v1169_v23 = vpop.f32.mrf.mxu2 }
 0x1e2   : > { %v4099_v50 = vadd.f32 %v1169_v23, %v3962_v46  ;;  %v1113_v25 = vpop.f32.mrf.mxu0  ;;  %v1142_v59 = vpop.f32.mrf.mxu1  ;;  %v1979_v46 = vld [vmem:[%s4738_s3 + $0x10] sm:$0xff] }
 0x1e3   : > { %v4102_v54 = vadd.f32 %v1113_v25, %v3975_v48  ;;  %v4105_v40 = vadd.f32 %v1142_v59, %v3985_v1  ;;  %1997 = vperm.xlu1 %3303, %v1979_v46   ;;  %v4136_v7 = vpop.f32.mrf.mxu3  ;;  %v1980_v46 = vld [vmem:[%s4738_s3 + $0x18] sm:$0xff] }
 0x1e6   : > { %3118 = vmatmul.msk.bf16.gmra.mxu3 %vm448_vm1, %v4110_v36 }
 0x1e9   : > { %v1171_v37 = vpop.f32.mrf.mxu2 }
 0x1ea   : > { %v4116_v48 = vadd.f32 %v1171_v37, %v3977_v61  ;;  %v1116_v1 = vpop.f32.mrf.mxu0  ;;  %v1145_v57 = vpop.f32.mrf.mxu1  ;;  %v1786_v61 = vsel %vm461_vm0, %v1770_v43, 0  ;;  %v1910_v37 = vld [vmem:[%s4737_s2 + $0x28] sm:$0xff] }
 0x1eb   : > { %v1195_v33 = vadd.f32 %v1116_v1, %v3991_v19  ;;  %v4122_v52 = vadd.f32 %v1145_v57, %v4007_v22  ;;  %1801 = vmatpush.bf16.msra.mxu0 %v1786_v61  ;;  %v1905_v19 = vld [vmem:[%s4737_s2] sm:$0xff]  ;;  %v1299_v15 = vpop.f32.mrf.mxu3 }
 0x1ec   : > { %1915 = vperm.xlu1 %3303, %v1905_v19  }
 0x1ed   : > { %v4126_v60 = vadd.f32 %v1289_v39, %v1195_v33  ;;  %3080 = vmatmul.msk.bf16.gmra.mxu0 %vm448_vm1, %v3920_v20  ;;  %3108 = vmatmul.msk.bf16.gmra.mxu1 %vm448_vm1, %v3222_v58 }
 0x1ee   : > { %3112 = vmatmul.msk.bf16.gmra.mxu2 %vm448_vm1, %v3222_v58  ;;  %v1768_v58 = vpop.permute.xlu1 %1767 }
 0x1ef   : > { %v1772_v41 = vsel %vm1769_vm9, %v1766_v3, %v1768_v58  ;;  %v1911_v58 = vld [vmem:[%s4737_s2 + $0x30] sm:$0xff]  ;;  %v1982_v3 = vld [vmem:[%s4738_s3 + $0x28] sm:$0xff] }
 0x1f0   : > { %v1792_v18 = vsel %vm461_vm0, %v1772_v41, 0 }
 0x1f1   : > { %v1174_v22 = vpop.f32.mrf.mxu2  ;;  %1859 = vmatpush.bf16.msra.mxu2 %v1792_v18 }
 0x1f2   : > { %v4139_v8 = vadd.f32 %v1174_v22, %v3997_v13  ;;  %v1118_v10 = vpop.f32.mrf.mxu0  ;;  %v1147_v20 = vpop.f32.mrf.mxu1  ;;  %v1908_v13 = vld [vmem:[%s4737_s2 + $0x18] sm:$0xff] }
 0x1f3   : > { %v4142_v17 = vadd.f32 %v1118_v10, %v4011_v49  ;;  %v4145_v6 = vadd.f32 %v1147_v20, %v4022_v55  ;;  %v1978_v49 = vld [vmem:[%s4738_s3 + $0x8] sm:$0xff]  ;;  %1930 = vperm.xlu0 %3302, %v1908_v13   ;;  %v4190_v16 = vpop.f32.mrf.mxu3 }
 0x1f4   : > { %1992 = vperm.xlu1 %3303, %v1978_v49  }
 0x1f9   : > { %v1176_v55 = vpop.f32.mrf.mxu2 }
 0x1fa   : > { %v4158_v28 = vadd.f32 %v1176_v55, %v4013_v32  ;;  %v1121_v24 = vpop.f32.mrf.mxu0  ;;  %v1150_v39 = vpop.f32.mrf.mxu1  ;;  %v1907_v32 = vld [vmem:[%s4737_s2 + $0x10] sm:$0xff] }
 0x1fb   : > { %v1201_v47 = vadd.f32 %v1121_v24, %v4027_v26  ;;  %v4162_v29 = vadd.f32 %v1150_v39, %v4038_v2  ;;  %1925 = vperm.xlu2 %3301, %v1907_v32   ;;  %v1977_v26 = vld [vmem:[%s4738_s3] sm:$0xff]  ;;  %v1983_v2 = vld [vmem:[%s4738_s3 + $0x30] sm:$0xff]  ;;  %v1486_v61 = vpop.f32.mrf.mxu3 }
 0x1fc   : > { %1987 = vperm.xlu0 %3302, %v1977_v26   ;;  %2017 = vperm.xlu1 %3303, %v1983_v2   ;;  %v1981_v32 = vld [vmem:[%s4738_s3 + $0x20] sm:$0xff]  ;;  %v3226_v2 = vld [vmem:[%s4736_s1 + $0x108] sm:$0xff] }
 0x1fd   : > { %v4164_v53 = vadd.f32 %v1294_v51, %v1201_v47  ;;  %3081 = vmatmul.msk.bf16.gmra.mxu0 %vm448_vm1, %v3951_v34  ;;  %3109 = vmatmul.msk.bf16.gmra.mxu1 %vm448_vm1, %v4079_v14 }
 0x1fe   : > { %3113 = vmatmul.msk.bf16.gmra.mxu2 %vm448_vm1, %v4079_v14 }
 0x201   : > { %v1179_v34 = vpop.f32.mrf.mxu2 }
 0x202   : > { %v4182_v23 = vadd.f32 %v1179_v34, %v4029_v5  ;;  %v1123_v14 = vpop.f32.mrf.mxu0  ;;  %v1152_v25 = vpop.f32.mrf.mxu1  ;;  %v1912_v5 = vld [vmem:[%s4737_s2 + $0x38] sm:$0xff] }
 0x203   : > { %v4185_v59 = vadd.f32 %v1123_v14, %v4042_v56  ;;  %v4188_v51 = vadd.f32 %v1152_v25, %v4052_v38  ;;  %2002 = vperm.xlu2 %3301, %v1980_v46  }
 0x204   : > { %1950 = vperm.xlu0 %3302, %v1912_v5   ;;  %1940 = vperm.xlu1 %3303, %v1910_v37   ;;  %v2090_v5 = vld [vmem:[%s4740_s5] sm:$0x7] }
 0x209   : > { %v1181_v56 = vpop.f32.mrf.mxu2 }
 0x20a   : > { %v4202_v38 = vadd.f32 %v1181_v56, %v4044_v27  ;;  %v1126_v1 = vpop.f32.mrf.mxu0  ;;  %v1155_v57 = vpop.f32.mrf.mxu1  ;;  %v1906_v27 = vld [vmem:[%s4737_s2 + $0x8] sm:$0xff] }
 0x20b   : > { %v1207_v33 = vadd.f32 %v1126_v1, %v4057_v9  ;;  %v4206_v63 = vadd.f32 %v1155_v57, %v4068_v31  ;;  %1920 = vperm.xlu2 %3301, %v1906_v27   ;;  %v1909_v9 = vld [vmem:[%s4737_s2 + $0x20] sm:$0xff] }
 0x20c   : > { %1935 = vperm.xlu0 %3302, %v1909_v9  }
 0x20d   : > { %v4208_v43 = vadd.f32 %v1299_v15, %v1207_v33  ;;  %3082 = vmatmul.msk.bf16.gmra.mxu0 %vm448_vm1, %v3982_v35  ;;  %3110 = vmatmul.msk.bf16.gmra.mxu1 %vm448_vm1, %v4110_v36  ;;  %v2174_v35 = vld [vmem:[%s4742_s7] sm:$0xff]  ;;  %v1371_v33 = vadd.f32 %v4095_v30, %v4142_v17 }
 0x20e   : > { %3114 = vmatmul.msk.bf16.gmra.mxu2 %vm448_vm1, %v4110_v36  ;;  %2179 = vperm.xlu1 %3303, %v2174_v35  }
 0x211   : > { %v1184_v31 = vpop.f32.mrf.mxu2 }
 0x212   : > { %v4226_v19 = vadd.f32 %v1184_v31, %v4059_v62  ;;  %v1128_v36 = vpop.f32.mrf.mxu0  ;;  %v1157_v22 = vpop.f32.mrf.mxu1  ;;  %v2176_v62 = vld [vmem:[%s4742_s7 + $0x10] sm:$0xff] }
 0x213   : > { %v4229_v10 = vadd.f32 %v1128_v36, %v4072_v21  ;;  %v4232_v20 = vadd.f32 %v1157_v22, %v4082_v11  ;;  %1945 = vperm.xlu2 %3301, %v1911_v58   ;;  %v3225_v21 = vld [vmem:[%s4736_s1 + $0x100] sm:$0xff]  ;;  %v4246_v11 = vpop.f32.mrf.mxu3 }
 0x214   : > { %2012 = vperm.xlu0 %3302, %v1982_v3  }
 0x216   : > { %2189 = vperm.xlu1 %3303, %v2176_v62  }
 0x219   : > { %v1186_v12 = vpop.f32.mrf.mxu2 }
 0x21a   : > { %v4249_v41 = vadd.f32 %v1186_v12, %v4074_v44  ;;  %v1313_v0 = vpop.f32.mrf.mxu0  ;;  %v1342_v18 = vpop.f32.mrf.mxu1  ;;  %v1984_v44 = vld [vmem:[%s4738_s3 + $0x38] sm:$0xff]  ;;  %v1377_v12 = vadd.f32 %v4136_v7, %v4185_v59 }
 0x21b   : > { %v1363_v13 = vadd.f32 %v1313_v0, %v4088_v42  ;;  %v4253_v49 = vadd.f32 %v1342_v18, %v4099_v50  ;;  %2022 = vperm.xlu2 %3301, %v1984_v44   ;;  %v2175_v42 = vld [vmem:[%s4742_s7 + $0x8] sm:$0xff]  ;;  %v4273_v15 = vpop.f32.mrf.mxu3  ;;  %v3228_v0 = vld [vmem:[%s4736_s1 + $0x118] sm:$0xff] }
 0x21c   : > { %2184 = vperm.xlu0 %3302, %v2175_v42  }
 0x21d   : > { %v4255_v55 = vadd.f32 %v1486_v61, %v1363_v13  ;;  %3143 = vmatmul.msk.bf16.vlgmr.msra.gmra.mxu0 %vm448_vm1, %v3225_v21  ;;  %3147 = vmatmul.msk.bf16.vlgmr.msra.gmra.mxu1 %vm448_vm1, %v3225_v21  ;;  %v3227_v61 = vld [vmem:[%s4736_s1 + $0x110] sm:$0xff] }
 0x21e   : > { %3151 = vmatmul.msk.bf16.vlgmr.msra.gmra.mxu2 %vm448_vm1, %v3225_v21 }
 0x221   : > { %v1457_v24 = vpop.f32.mrf.mxu2 }
 0x222   : > { %v4267_v50 = vadd.f32 %v1457_v24, %v4090_v45  ;;  %v4269_v39 = vpop.f32.mrf.mxu0  ;;  %v4271_v47 = vpop.f32.mrf.mxu1 }
 0x223   : > { %2007 = vperm.xlu2 %3301, %v1981_v32   ;;  %v4291_v46 = vpop.f32.mrf.mxu3 }
 0x229   : > { %v4278_v26 = vpop.f32.mrf.mxu2 }
 0x22a   : > { %v1318_v34 = vpop.f32.mrf.mxu0  ;;  %v1347_v45 = vpop.f32.mrf.mxu1 }
 0x22b   : > { %v4284_v14 = vadd.f32 %v1318_v34, %v4122_v52  ;;  %v4287_v25 = vadd.f32 %v1347_v45, %v4139_v8  ;;  %2093 = vperm.xlu2 %3301, %v2090_v5   ;;  %v1496_v57 = vpop.f32.mrf.mxu3 }
 0x22d   : > { %3144 = vmatmul.msk.bf16.gmra.mxu0 %vm448_vm1, %v3226_v2  ;;  %3148 = vmatmul.msk.bf16.gmra.mxu1 %vm448_vm1, %v3226_v2 }
 0x22e   : > { %3152 = vmatmul.msk.bf16.gmra.mxu2 %vm448_vm1, %v3226_v2 }
 0x231   : > { %v1462_v37 = vpop.f32.mrf.mxu2 }
 0x232   : > { %v4298_v52 = vadd.f32 %v1462_v37, %v4126_v60  ;;  %v1320_v56 = vpop.f32.mrf.mxu0  ;;  %v4300_v8 = vpop.f32.mrf.mxu1  ;;  %v1365_v37 = vadd.f32 %v4049_v4, %v4102_v54 }
 0x233   : > { %v4303_v1 = vadd.f32 %v1320_v56, %v4145_v6  ;;  %v1498_v17 = vpop.f32.mrf.mxu3 }
 0x239   : > { %v1464_v27 = vpop.f32.mrf.mxu2 }
 0x23a   : > { %v4310_v9 = vadd.f32 %v1464_v27, %v1371_v33  ;;  %v1323_v35 = vpop.f32.mrf.mxu0  ;;  %v1352_v60 = vpop.f32.mrf.mxu1 }
 0x23b   : > { %v1375_v31 = vadd.f32 %v1323_v35, %v4162_v29  ;;  %v4314_v36 = vadd.f32 %v1352_v60, %v4182_v23 }
 0x23d   : > { %v4316_v6 = vadd.f32 %v1496_v57, %v1375_v31  ;;  %3145 = vmatmul.msk.bf16.gmra.mxu0 %vm448_vm1, %v3227_v61  ;;  %3149 = vmatmul.msk.bf16.gmra.mxu1 %vm448_vm1, %v3227_v61 }
 0x23e   : > { %3153 = vmatmul.msk.bf16.gmra.mxu2 %vm448_vm1, %v3227_v61 }
 0x241   : > { %v1467_v30 = vpop.f32.mrf.mxu2 }
 0x242   : > { %v1547_v22 = vadd.f32 %v1467_v30, %v4164_v53  ;;  %v1325_v58 = vpop.f32.mrf.mxu0  ;;  %v1354_v3 = vpop.f32.mrf.mxu1 }
 0x243   : > { %v1378_v62 = vadd.f32 %v1325_v58, %v4188_v51  ;;  %v1379_v29 = vadd.f32 %v1354_v3, %v4202_v38 }
 0x245   : > { %v1551_v23 = vadd.f32 %v1498_v17, %v1378_v62  ;;  %v4378_v17 = vpop.f32.mrf.mxu3 }
 0x249   : > { %v1469_v21 = vpop.f32.mrf.mxu2 }
 0x24a   : > { %v1550_v18 = vadd.f32 %v1469_v21, %v1377_v12  ;;  %v1328_v13 = vpop.f32.mrf.mxu0  ;;  %v1357_v44 = vpop.f32.mrf.mxu1 }
 0x24b   : > { %v4330_v53 = vadd.f32 %v1328_v13, %v4206_v63  ;;  %v1382_v42 = vadd.f32 %v1357_v44, %v4226_v19  ;;  %v1383_v63 = vadd.f32 %v4190_v16, %v4229_v10 }
 0x24d   : > { %3146 = vmatmul.msk.bf16.gmra.mxu0 %vm448_vm1, %v3228_v0  ;;  %3150 = vmatmul.msk.bf16.gmra.mxu1 %vm448_vm1, %v3228_v0  ;;  %v4392_v21 = vpop.f32.mrf.mxu3 }
 0x24e   : > { %3154 = vmatmul.msk.bf16.gmra.mxu2 %vm448_vm1, %v3228_v0 }
 0x251   : > { %v1472_v7 = vpop.f32.mrf.mxu2 }
 0x252   : > { %v1553_v59 = vadd.f32 %v1472_v7, %v4208_v43  ;;  %v1330_v51 = vpop.f32.mrf.mxu0  ;;  %v1359_v38 = vpop.f32.mrf.mxu1 }
 0x253   : > { %v4338_v24 = vadd.f32 %v1330_v51, %v4232_v20  ;;  %v1385_v32 = vadd.f32 %v1359_v38, %v4249_v41  ;;  %v1367_v20 = vadd.f32 %v4271_v47, %v4116_v48  ;;  %v1538_v41 = vadd.f32 %v4278_v26, %v1365_v37 }
 0x254   : > { %v1373_v26 = vadd.f32 %v4300_v8, %v4158_v28 }
 0x255   : > { %v4396_v7 = vpop.permute.xlu2 %1925  ;;  %v4402_v38 = vpop.permute.xlu1 %1997 }
 0x259   : > { %v1474_v19 = vpop.f32.mrf.mxu2 }
 0x25a   : > { %v4343_v2 = vadd.f32 %v1474_v19, %v1383_v63  ;;  %v1515_v34 = vpop.f32.mrf.mxu0  ;;  %v1630_v45 = vpop.f32.mrf.mxu1 }
 0x25b   : > { %v4346_v5 = vadd.f32 %v1515_v34, %v4253_v49  ;;  %v1708_v43 = vadd.f32 %v1630_v45, %v4267_v50  ;;  %v1366_v49 = vadd.f32 %v4269_v39, %v4105_v40 }
 0x25d   : > { %v1539_v50 = vadd.f32 %v4246_v11, %v1366_v49  ;;  %v4412_v34 = vpop.permute.xlu2 %2002 }
 0x261   : > { %v1659_v56 = vpop.f32.mrf.mxu2 }
 0x262   : > { %v1709_v16 = vadd.f32 %v1659_v56, %v4255_v55  ;;  %v1517_v10 = vpop.f32.mrf.mxu0  ;;  %v1632_v57 = vpop.f32.mrf.mxu1 }
 0x263   : > { %v4355_v33 = vadd.f32 %v1517_v10, %v1367_v20  ;;  %v4357_v27 = vadd.f32 %v1632_v57, %v1538_v41  ;;  %v1916_v56 = vpop.permute.xlu1 %1915 }
 0x269   : > { %v1661_v4 = vpop.f32.mrf.mxu2 }
 0x26a   : > { %v1712_v54 = vadd.f32 %v1661_v4, %v1539_v50  ;;  %v1520_v61 = vpop.f32.mrf.mxu0  ;;  %v1635_v48 = vpop.f32.mrf.mxu1 }
 0x26b   : > { %v4363_v47 = vadd.f32 %v1520_v61, %v4287_v25  ;;  %v4366_v55 = vadd.f32 %v1635_v48, %v4298_v52  ;;  %v1921_v50 = vpop.permute.xlu2 %1920 }
 0x271   : > { %v4370_v35 = vpop.f32.mrf.mxu2 }
 0x272   : > { %v1522_v60 = vpop.f32.mrf.mxu0  ;;  %v4372_v31 = vpop.f32.mrf.mxu1 }
 0x273   : > { %v4374_v40 = vadd.f32 %v1522_v60, %v1373_v26 }
 0x279   : > { %v4376_v11 = vpop.f32.mrf.mxu2 }
 0x27a   : > { %v1525_v39 = vpop.f32.mrf.mxu0  ;;  %v1640_v30 = vpop.f32.mrf.mxu1 }
 0x27b   : > { %v4381_v25 = vadd.f32 %v1525_v39, %v4314_v36  ;;  %v4383_v52 = vadd.f32 %v1640_v30, %v1547_v22 }
 0x281   : > { %v1669_v58 = vpop.f32.mrf.mxu2 }
 0x282   : > { %v4386_v28 = vadd.f32 %v1669_v58, %v4316_v6  ;;  %v1527_v8 = vpop.f32.mrf.mxu0  ;;  %v1642_v3 = vpop.f32.mrf.mxu1 }
 0x283   : > { %v4388_v62 = vadd.f32 %v1527_v8, %v1379_v29  ;;  %v4390_v12 = vadd.f32 %v1642_v3, %v1550_v18  ;;  %v1688_v6 = vpop.f32.mrf.mxu3 }
 0x289   : > { %v1671_v0 = vpop.f32.mrf.mxu2 }
 0x28a   : > { %v4394_v13 = vadd.f32 %v1671_v0, %v1551_v23  ;;  %v1530_v44 = vpop.f32.mrf.mxu0  ;;  %v1645_v36 = vpop.f32.mrf.mxu1 }
 0x28b   : > { %v4398_v22 = vadd.f32 %v1530_v44, %v1382_v42  ;;  %v4400_v51 = vadd.f32 %v1645_v36, %v1553_v59  ;;  %v4410_v23 = vpop.permute.xlu0 %1930  ;;  %v1690_v45 = vpop.f32.mrf.mxu3 }
 0x291   : > { %v4404_v29 = vpop.f32.mrf.mxu2 }
 0x292   : > { %v1532_v18 = vpop.f32.mrf.mxu0  ;;  %v4406_v63 = vpop.f32.mrf.mxu1 }
 0x293   : > { %v4408_v19 = vadd.f32 %v1532_v18, %v1385_v32  ;;  %v1988_v49 = vpop.permute.xlu0 %1987  ;;  %v1710_v32 = vadd.f32 %v1688_v6, %v4346_v5  ;;  %v1693_v8 = vpop.f32.mrf.mxu3  ;;  %v1713_v6 = vadd.f32 %v1690_v45, %v4355_v33 }
 0x294   : > { %v1993_v18 = vpop.permute.xlu1 %1992 }
 0x299   : > { %v4414_v37 = vpop.f32.mrf.mxu2 }
 0x29a   : > { %v1803_v42 = vpop.f32.mrf.mxu0  ;;  %v1832_v59 = vpop.f32.mrf.mxu1 }
 0x29b   : > { %v1881_v20 = vadd.f32 %v1803_v42, %v1708_v43  ;;  %v1882_v41 = vadd.f32 %v1832_v59, %v1709_v16  ;;  %v1542_v42 = vadd.f32 %v4273_v15, %v4284_v14  ;;  %v1695_v33 = vpop.f32.mrf.mxu3 }
 0x29d   : > { %v1953_v10 = vmul.f32 %v1916_v56, %v1881_v20  ;;  %v1954_v57 = vmul.f32 %v1916_v56, %v1882_v41  ;;  %v1715_v41 = vadd.f32 %v4370_v35, %v1542_v42  ;;  %v1717_v42 = vadd.f32 %v4372_v31, %v4310_v9 }
 0x29f   : > { %v2025_v4 = vadd.f32 %v1988_v49, %v1953_v10  ;;  %v2026_v61 = vadd.f32 %v1988_v49, %v1954_v57  ;;  %v4422_v10 = vpop.permute.xlu2 %1945 }
 0x2a1   : > { %v2049_v48 = vmax.f32 %v2025_v4, 0.0  ;;  %v2050_v26 = vmax.f32 %v2026_v61, 0.0  ;;  %v1861_v60 = vpop.f32.mrf.mxu2 }
 0x2a2   : > { %v1883_v39 = vadd.f32 %v1861_v60, %v1710_v32  ;;  %v1805_v30 = vpop.f32.mrf.mxu0  ;;  %v1834_v58 = vpop.f32.mrf.mxu1 }
 0x2a3   : > { %v2073_v3 = vpack.c.bf16 %v2050_v26, %v2049_v48  ;;  %v1884_v43 = vadd.f32 %v1805_v30, %v4357_v27  ;;  %v1885_v16 = vadd.f32 %v1834_v58, %v1712_v54  ;;  %v1545_v58 = vadd.f32 %v4291_v46, %v4303_v1 }
 0x2a4   : > { %v1955_v0 = vmul.f32 %v1916_v56, %v1883_v39 }
 0x2a5   : > { %v1956_v44 = vmul.f32 %v1921_v50, %v1884_v43  ;;  %v1957_v36 = vmul.f32 %v1921_v50, %v1885_v16  ;;  %v2104_v60 = vunpack.c.l.b16 %v2073_v3  ;;  %v2105_v39 = vunpack.c.h.b16 %v2073_v3 }
 0x2a6   : > { %v2027_v20 = vadd.f32 %v1988_v49, %v1955_v0  ;;  %v1716_v3 = vadd.f32 %v1693_v8, %v4363_v47 }
 0x2a7   : > { %v2028_v59 = vadd.f32 %v1993_v18, %v1956_v44  ;;  %v2029_v5 = vadd.f32 %v1993_v18, %v1957_v36  ;;  %v4441_v47 = vpop.permute.xlu2 %2022 }
 0x2a8   : > { %v2051_v15 = vmax.f32 %v2027_v20, 0.0 }
 0x2a9   : > { %v2052_v57 = vmax.f32 %v2028_v59, 0.0  ;;  %v2053_v4 = vmax.f32 %v2029_v5, 0.0  ;;  %v1863_v27 = vpop.f32.mrf.mxu2  ;;  %v1718_v59 = vadd.f32 %v4376_v11, %v1545_v58  ;;  %v4439_v5 = vpop.permute.xlu0 %1950 }
 0x2aa   : > { %v1886_v54 = vadd.f32 %v1863_v27, %v1713_v6  ;;  %v1808_v56 = vpop.f32.mrf.mxu0  ;;  %v1837_v61 = vpop.f32.mrf.mxu1  ;;  %v2074_v44 = vpack.c.bf16 %v2051_v15, %v2051_v15  ;;  %v1719_v15 = vadd.f32 %v1695_v33, %v4374_v40 }
 0x2ab   : > { %v2075_v32 = vpack.c.bf16 %v2053_v4, %v2052_v57  ;;  %v1887_v48 = vadd.f32 %v1808_v56, %v4366_v55  ;;  %v1888_v26 = vadd.f32 %v1837_v61, %v1715_v41 }
 0x2ac   : > { %v1958_v14 = vmul.f32 %v1921_v50, %v1886_v54  ;;  %v2106_v56 = vunpack.c.l.b16 %v2074_v44 }
 0x2ad   : > { %v1959_v45 = vmul.f32 %v4396_v7, %v1887_v48  ;;  %v1960_v35 = vmul.f32 %v4396_v7, %v1888_v26  ;;  %v2107_v49 = vunpack.c.l.b16 %v2075_v32  ;;  %v2108_v30 = vunpack.c.h.b16 %v2075_v32  ;;  %v1698_v32 = vpop.f32.mrf.mxu3 }
 0x2ae   : > { %v2030_v43 = vadd.f32 %v1993_v18, %v1958_v14 }
 0x2af   : > { %v2031_v16 = vadd.f32 %v4402_v38, %v1959_v45  ;;  %v2032_v55 = vadd.f32 %v4402_v38, %v1960_v35  ;;  %v4431_v0 = vpack.c.b16 %v2107_v49, %v2104_v60  ;;  %v4433_v50 = vpack.c.b16 %v2108_v30, %v2105_v39  ;;  %v4452_v60 = vpop.permute.xlu1 %2017 }
 0x2b0   : > { %v2054_v36 = vmax.f32 %v2030_v43, 0.0 }
 0x2b1   : > { %v2055_v46 = vmax.f32 %v2031_v16, 0.0  ;;  %v2056_v1 = vmax.f32 %v2032_v55, 0.0  ;;  %v1866_v18 = vpop.f32.mrf.mxu2  ;;  %v1936_v55 = vpop.permute.xlu0 %1935 }
 0x2b2   : > { %v2076_v6 = vpack.c.bf16 %v2054_v36, %v2054_v36  ;;  %v1889_v20 = vadd.f32 %v1866_v18, %v1716_v3  ;;  %v1810_v41 = vpop.f32.mrf.mxu0  ;;  %v1839_v57 = vpop.f32.mrf.mxu1 }
 0x2b3   : > { %v2077_v4 = vpack.c.bf16 %v2056_v1, %v2055_v46  ;;  %v1890_v27 = vadd.f32 %v1810_v41, %v1717_v42  ;;  %v1891_v54 = vadd.f32 %v1839_v57, %v1718_v59  ;;  %v2008_v46 = vpop.permute.xlu2 %2007 }
 0x2b4   : > { %v1961_v8 = vmul.f32 %v4396_v7, %v1889_v20  ;;  %v2109_v9 = vunpack.c.l.b16 %v2076_v6 }
 0x2b5   : > { %v1962_v31 = vmul.f32 %v4410_v23, %v1890_v27  ;;  %v1963_v11 = vmul.f32 %v4410_v23, %v1891_v54  ;;  %v2110_v3 = vunpack.c.l.b16 %v2077_v4  ;;  %v2111_v44 = vunpack.c.h.b16 %v2077_v4  ;;  %v1700_v27 = vpop.f32.mrf.mxu3 }
 0x2b6   : > { %v4446_v61 = vpack.c.b16 %v2109_v9, %v2106_v56  ;;  %v2033_v14 = vadd.f32 %v4402_v38, %v1961_v8 }
 0x2b7   : > { %v2034_v48 = vadd.f32 %v4412_v34, %v1962_v31  ;;  %v2035_v26 = vadd.f32 %v4412_v34, %v1963_v11 }
 0x2b8   : > { %v2057_v36 = vmax.f32 %v2033_v14, 0.0 }
 0x2b9   : > { %v2058_v7 = vmax.f32 %v2034_v48, 0.0  ;;  %v2059_v39 = vmax.f32 %v2035_v26, 0.0  ;;  %v1868_v45 = vpop.f32.mrf.mxu2  ;;  %v1941_v26 = vpop.permute.xlu1 %1940 }
 0x2ba   : > { %v1892_v35 = vadd.f32 %v1868_v45, %v1719_v15  ;;  %v1813_v49 = vpop.f32.mrf.mxu0  ;;  %v1842_v30 = vpop.f32.mrf.mxu1 }
 0x2bb   : > { %v2079_v58 = vpack.c.bf16 %v2059_v39, %v2058_v7  ;;  %v1893_v43 = vadd.f32 %v1813_v49, %v4383_v52  ;;  %v1894_v16 = vadd.f32 %v1842_v30, %v4386_v28  ;;  %v1722_v52 = vadd.f32 %v1698_v32, %v4381_v25  ;;  %v4465_v39 = vld [vmem:[%s4739_s4] sm:$0x3]  ;;  %v2013_v45 = vpop.permute.xlu0 %2012 }
 0x2bc   : > { %v1964_v40 = vmul.f32 %v4410_v23, %v1892_v35  ;;  %v2078_v28 = vpack.c.bf16 %v2057_v36, %v2057_v36  ;;  %v1725_v30 = vadd.f32 %v1700_v27, %v4388_v62 }
 0x2bd   : > { %v2113_v38 = vunpack.c.l.b16 %v2079_v58  ;;  %v2114_v33 = vunpack.c.h.b16 %v2079_v58  ;;  %v1965_v42 = vmul.f32 %v1936_v55, %v1893_v43  ;;  %v1966_v59 = vmul.f32 %v1936_v55, %v1894_v16 }
 0x2be   : > { %v2036_v1 = vadd.f32 %v4412_v34, %v1964_v40  ;;  %v2112_v15 = vunpack.c.l.b16 %v2078_v28  ;;  %v1703_v40 = vpop.f32.mrf.mxu3 }
 0x2bf   : > { %v2037_v18 = vadd.f32 %v2008_v46, %v1965_v42  ;;  %v2038_v6 = vadd.f32 %v2008_v46, %v1966_v59  ;;  %v2119_v20 = vpack.c.b16 %v2113_v38, %v2110_v3  ;;  %v2120_v41 = vpack.c.b16 %v2114_v33, %v2111_v44 }
 0x2c0   : > { %v2060_v57 = vmax.f32 %v2036_v1, 0.0  ;;  %v1728_v28 = vadd.f32 %v1703_v40, %v4398_v22 }
 0x2c1   : > { %v2061_v4 = vmax.f32 %v2037_v18, 0.0  ;;  %v2062_v54 = vmax.f32 %v2038_v6, 0.0  ;;  %v1871_v8 = vpop.f32.mrf.mxu2  ;;  %2138 = vmatpush.bf16.msra.mxu3 %v2119_v20  ;;  %v1557_v6 = vadd.f32 %v4392_v21, %v4338_v24 }
 0x2c2   : > { %v2080_v23 = vpack.c.bf16 %v2060_v57, %v2060_v57  ;;  %v1895_v56 = vadd.f32 %v1871_v8, %v1722_v52  ;;  %v1815_v9 = vpop.f32.mrf.mxu0  ;;  %v1844_v31 = vpop.f32.mrf.mxu1 }
 0x2c3   : > { %v2081_v11 = vpack.c.bf16 %v2062_v54, %v2061_v4  ;;  %v1896_v34 = vadd.f32 %v1815_v9, %v4390_v12  ;;  %v1897_v48 = vadd.f32 %v1844_v31, %v4394_v13  ;;  %v1554_v12 = vadd.f32 %v4378_v17, %v4330_v53 }
 0x2c4   : > { %v2115_v14 = vunpack.c.l.b16 %v2080_v23  ;;  %v1967_v25 = vmul.f32 %v1936_v55, %v1895_v56  ;;  %v1729_v4 = vadd.f32 %v4406_v63, %v4343_v2  ;;  %v1730_v54 = vadd.f32 %v4414_v37, %v1557_v6 }
 0x2c5   : > { %v1968_v32 = vmul.f32 %v1941_v26, %v1896_v34  ;;  %v1969_v7 = vmul.f32 %v1941_v26, %v1897_v48  ;;  %2139 = vmatpush.bf16.msra.mxu3 %v4431_v0  ;;  %v1727_v0 = vadd.f32 %v4404_v29, %v1554_v12  ;;  %v2208_v42 = vunpack.c.l.b16 %v2081_v11 }
 0x2c6   : > { %v2121_v35 = vpack.c.b16 %v2115_v14, %v2112_v15  ;;  %v2039_v58 = vadd.f32 %v2008_v46, %v1967_v25  ;;  %v2209_v59 = vunpack.c.h.b16 %v2081_v11  ;;  %v1705_v15 = vpop.f32.mrf.mxu3 }
 0x2c7   : > { %v2040_v13 = vadd.f32 %v2013_v45, %v1968_v32  ;;  %v2041_v49 = vadd.f32 %v2013_v45, %v1969_v7  ;;  %v1731_v32 = vadd.f32 %v1705_v15, %v4408_v19  ;;  %v2173_v19 = vld [vmem:[%s4741_s6 + $0x8] sm:$0xf]  ;;  %v4543_v15 = vpop.permute.xlu0 %2184 }
 0x2c8   : > { %3155 = vmatmul.msk.bf16.vlgmr.msra.gmra.mxu3 %vm2128_vm10, %v4465_v39  ;;  %v2063_v62 = vmax.f32 %v2039_v58, 0.0  ;;  %v2197_v40 = vunpack.c.l.b16 %v2173_v19 }
 0x2c9   : > { %2151 = vmatpush.bf16.msrb.mxu3 %v2120_v41  ;;  %v2064_v43 = vmax.f32 %v2040_v13, 0.0  ;;  %v2065_v16 = vmax.f32 %v2041_v49, 0.0  ;;  %v1873_v55 = vpop.f32.mrf.mxu2 }
 0x2ca   : > { %v1898_v3 = vadd.f32 %v1873_v55, %v1725_v30  ;;  %v1818_v44 = vpop.f32.mrf.mxu0  ;;  %v1847_v36 = vpop.f32.mrf.mxu1  ;;  %v2082_v57 = vpack.c.bf16 %v2063_v62, %v2063_v62 }
 0x2cb   : > { %v2083_v53 = vpack.c.bf16 %v2065_v16, %v2064_v43  ;;  %v1899_v17 = vadd.f32 %v1818_v44, %v4400_v51  ;;  %v1900_v38 = vadd.f32 %v1847_v36, %v1727_v0 }
 0x2cc   : > { %v1970_v33 = vmul.f32 %v1941_v26, %v1898_v3  ;;  %v2210_v22 = vunpack.c.l.b16 %v2082_v57 }
 0x2cd   : > { %2152 = vmatpush.bf16.msrb.mxu3 %v4433_v50  ;;  %v1971_v29 = vmul.f32 %v4422_v10, %v1899_v17  ;;  %v1972_v46 = vmul.f32 %v4422_v10, %v1900_v38  ;;  %v2211_v1 = vunpack.c.l.b16 %v2083_v53  ;;  %v2212_v18 = vunpack.c.h.b16 %v2083_v53 }
 0x2ce   : > { %v2042_v50 = vadd.f32 %v2013_v45, %v1970_v33  ;;  %v2199_v38 = vpack.c.b16 %v2197_v40, %v2197_v40  ;;  %v2094_v33 = vpop.permute.xlu2 %2093 }
 0x2cf   : > { %v2043_v20 = vadd.f32 %v4452_v60, %v1971_v29  ;;  %v2044_v51 = vadd.f32 %v4452_v60, %v1972_v46  ;;  %v2220_v41 = vpack.c.b16 %v2211_v1, %v2208_v42  ;;  %v2221_v52 = vpack.c.b16 %v2212_v18, %v2209_v59 }
 0x2d0   : > { %v2066_v27 = vmax.f32 %v2042_v50, 0.0 }
 0x2d1   : > { %2164 = vmatpush.bf16.msra.mxu3 %v2121_v35  ;;  %v2067_v8 = vmax.f32 %v2043_v20, 0.0  ;;  %v2068_v24 = vmax.f32 %v2044_v51, 0.0  ;;  %v1876_v21 = vpop.f32.mrf.mxu2  ;;  %v4514_v20 = vpop.permute.xlu1 %2179  ;;  %v2349_v51 = vlaneseq }
 0x2d2   : > { %v2084_v23 = vpack.c.bf16 %v2066_v27, %v2066_v27  ;;  %v1901_v56 = vadd.f32 %v1876_v21, %v1728_v28  ;;  %v1820_v9 = vpop.f32.mrf.mxu0  ;;  %v1849_v31 = vpop.f32.mrf.mxu1 }
 0x2d3   : > { %v2085_v11 = vpack.c.bf16 %v2068_v24, %v2067_v8  ;;  %v1903_v34 = vadd.f32 %v1849_v31, %v1730_v54  ;;  %v4519_v28 = vshrl.u32 %v2349_v51, 7 }
 0x2d4   : > { %v1973_v48 = vmul.f32 %v4422_v10, %v1901_v56  ;;  %v2213_v26 = vunpack.c.l.b16 %v2084_v23 }
 0x2d5   : > { %2165 = vmatpush.bf16.msra.mxu3 %v4446_v61  ;;  %v1902_v61 = vadd.f32 %v1820_v9, %v1729_v4  ;;  %v1975_v2 = vmul.f32 %v4439_v5, %v1903_v34  ;;  %v2214_v58 = vunpack.c.l.b16 %v2085_v11  ;;  %v2215_v0 = vunpack.c.h.b16 %v2085_v11 }
 0x2d6   : > { %v2222_v63 = vpack.c.b16 %v2213_v26, %v2210_v22  ;;  %v2045_v7 = vadd.f32 %v4452_v60, %v1973_v48  ;;  %vm2362_vm11 = vcmp.ge.s32.totalorder %v4519_v28, 6 }
 0x2d7   : > { %v1974_v14 = vmul.f32 %v4439_v5, %v1902_v61  ;;  %v2047_v25 = vadd.f32 %v4441_v47, %v1975_v2 }
 0x2d8   : > { %3156 = vmatmul.msk.bf16.vlgmr.msrb.gmra.mxu3 %vm2128_vm10, %v4465_v39  ;;  %v2069_v49 = vmax.f32 %v2045_v7, 0.0 }
 0x2d9   : > { %v2046_v37 = vadd.f32 %v4441_v47, %v1974_v14  ;;  %v2071_v45 = vmax.f32 %v2047_v25, 0.0  ;;  %v1878_v35 = vpop.f32.mrf.mxu2  ;;  %v4535_v23 = vpop.permute.xlu1 %2189 }
 0x2da   : > { %v1904_v12 = vadd.f32 %v1878_v35, %v1731_v32  ;;  %v2086_v44 = vpack.c.bf16 %v2069_v49, %v2069_v49 }
 0x2db   : > { %v2070_v10 = vmax.f32 %v2046_v37, 0.0 }
 0x2dc   : > { %v1976_v30 = vmul.f32 %v4439_v5, %v1904_v12  ;;  %v2216_v5 = vunpack.c.l.b16 %v2086_v44 }
 0x2dd   : > { %v2087_v13 = vpack.c.bf16 %v2071_v45, %v2070_v10 }
 0x2de   : > { %v2048_v55 = vadd.f32 %v4441_v47, %v1976_v30  ;;  %v3229_v47 = vld [vmem:[%s4741_s6] sm:$0xff] }
 0x2df   : > { %v2217_v43 = vunpack.c.l.b16 %v2087_v13  ;;  %v2218_v16 = vunpack.c.h.b16 %v2087_v13 }
 0x2e0   : > { %v2072_v36 = vmax.f32 %v2048_v55, 0.0 }
 0x2e1   : > { %v2223_v60 = vpack.c.b16 %v2217_v43, %v2214_v58  ;;  %v2224_v3 = vpack.c.b16 %v2218_v16, %v2215_v0 }
 0x2e2   : > { %v2088_v53 = vpack.c.bf16 %v2072_v36, %v2072_v36 }
 0x2e3   : > { %2244 = vmatpush.bf16.msrb.mxu3 %v2223_v60  ;;  %2262 = vmatpush.bf16.msrb.mxu0 %v2224_v3 }
 0x2e4   : > { %3230 = vmatpush.bf16.msrb.mxu2 %v2224_v3  ;;  %v2219_v17 = vunpack.c.l.b16 %v2088_v53 }
 0x2e6   : > { %v2225_v62 = vpack.c.b16 %v2219_v17, %v2216_v5 }
 0x2e7   : > { %2245 = vmatpush.bf16.msrb.mxu3 %v2220_v41  ;;  %2263 = vmatpush.bf16.msrb.mxu0 %v2221_v52 }
 0x2e8   : > { %3231 = vmatpush.bf16.msrb.mxu2 %v2221_v52  ;;  %2280 = vmatpush.bf16.msrb.mxu1 %v2225_v62 }
 0x2e9   : > { %3157 = vmatmul.msk.bf16.vlgmr.msra.gmra.mxu3 %vm2128_vm10, %v4465_v39 }
 0x2ea   : > { %3164 = vmatmul.msk.bf16.vlgmr.msrb.gmra.mxu0 %vm2128_vm10, %v3229_v47 }
 0x2eb   : > { %3165 = vmatmul.msk.bf16.vlgmr.msrb.gmra.mxu2 %vm2128_vm10, %v2199_v38 }
 0x2ec   : > { %2281 = vmatpush.bf16.msrb.mxu1 %v2222_v63 }
 0x2ef   : > { %3166 = vmatmul.msk.bf16.vlgmr.msrb.gmra.mxu1 %vm2128_vm10, %v3229_v47 }
 0x2f9   : > { %3162 = vmatmul.msk.bf16.vlgmr.msrb.gmra.mxu3 %vm2128_vm10, %v3229_v47 }
 0x2ff   : > { %3167 = vmatmul.msk.bf16.gmra.mxu1 %vm2128_vm10, %v2199_v38 }
 0x309   : > { %3163 = vmatmul.msk.bf16.gmra.mxu3 %vm2128_vm10, %v2199_v38 }
 0x34b   : > { %v2141_v42 = vpop.f32.mrf.mxu3 }
 0x34c   : > { %v2142_v59 = vadd.f32 %v2141_v42, %v2094_v33 }
 0x34e   : > { %v3168_v29 = vmul.f32 -1.442695, %v2142_v59 }
 0x350   : > { %3304 = vpow2.f32 %v3168_v29 }
 0x353   : > { %v2143_v39 = vpop.f32.mrf.mxu3 }
 0x356   : > { %v3305_v46 = vpop.eup %3304 }
 0x357   : > { %v4511_v1 = vadd.f32 1.0, %v3305_v46 }
 0x359   : > { %3306 = vrcp.f32 %v4511_v1  ;;  %v2315_v58 = vand.u32 2147483648, %v4511_v1  ;;  %vm2309_vm15 = vweird.f32 %v4511_v1 }
 0x35b   : > { %v2154_v18 = vpop.f32.mrf.mxu3 }
 0x35c   : > { %v2155_v6 = vadd.f32 %v2154_v18, %v2094_v33 }
 0x35e   : > { %v3169_v50 = vmul.f32 -1.442695, %v2155_v6  ;;  %v2316_v6 = vor.u32 1.1754944e-38, %v2315_v58 }
 0x35f   : > { %v4516_v52 = vpop.eup %3306 }
 0x360   : > { %3308 = vpow2.f32 %v3169_v50  ;;  %v2305_v8 = vmul.f32 %v4516_v52, %v4511_v1  ;;  %vm2310_vm13 = vweird.f32 %v4516_v52 }
 0x361   : > { %vm4575_vm2 = vmor %vm2309_vm15, %vm2310_vm13 }
 0x362   : > { %v2306_v34 = vsub.f32 1.0, %v2305_v8 }
 0x363   : > { %v2156_v41 = vpop.f32.mrf.mxu3 }
 0x364   : > { %v2307_v45 = vmul.f32 %v4516_v52, %v2306_v34 }
 0x366   : > { %v3309_v57 = vpop.eup %3308  ;;  %v2308_v40 = vadd.f32 %v4516_v52, %v2307_v45 }
 0x367   : > { %v2265_v27 = vpop.f32.mrf.mxu0  ;;  %v4521_v4 = vadd.f32 1.0, %v3309_v57 }
 0x368   : > { %v4524_v54 = vadd.f32 %v2265_v27, %v4514_v20 }
 0x369   : > { %3310 = vrcp.f32 %v4521_v4  ;;  %v2330_v0 = vand.u32 2147483648, %v4521_v4  ;;  %v2328_v60 = vand.u32 2147483647, %v4521_v4  ;;  %vm2324_vm14 = vweird.f32 %v4521_v4 }
 0x36a   : > { %v3172_v24 = vmul.f32 -1.442695, %v4524_v54  ;;  %v2552_v21 = vmul.f32 %v4524_v54, %v4524_v54 }
 0x36b   : > { %v2331_v42 = vor.u32 1.1754944e-38, %v2330_v0  ;;  %vm2329_vm3 = vcmp.eq.f32.partialorder %v2328_v60, 8.507059e+37 }
 0x36c   : > { %v2167_v56 = vpop.f32.mrf.mxu3  ;;  %3312 = vpow2.f32 %v3172_v24  ;;  %v2567_v9 = vsel %vm2362_vm11, %v2552_v21, 0.0  ;;  %v2283_v61 = vpop.f32.mrf.mxu1 }
 0x36d   : > { %v2168_v31 = vadd.f32 %v2167_v56, %v2094_v33  ;;  %v2585_v48 = vrot.slane %v2567_v9, 4  ;;  %v4541_v26 = vadd.f32 %v2283_v61, %v4514_v20  ;;  %v2313_v33 = vand.u32 2147483647, %v4511_v1 }
 0x36e   : > { %v2270_v11 = vpop.f32.mrf.mxu2  ;;  %v2312_v1 = vsel %vm4575_vm2, %v4516_v52, %v2308_v40 }
 0x36f   : > { %v2271_v22 = vadd.f32 %v2270_v11, %v4535_v23  ;;  %v3170_v14 = vmul.f32 -1.442695, %v2168_v31  ;;  %v2267_v2 = vpop.f32.mrf.mxu0  ;;  %v3311_v63 = vpop.eup %3310  ;;  %v2586_v37 = vadd.f32 %v2585_v48, %v2567_v9  ;;  %v3173_v25 = vmul.f32 -1.442695, %v4541_v26 }
 0x370   : > { %v2553_v32 = vmul.f32 %v4541_v26, %v4541_v26  ;;  %v2268_v7 = vadd.f32 %v2267_v2, %v4543_v15  ;;  %v2320_v10 = vmul.f32 %v3311_v63, %v4521_v4  ;;  %vm2325_vm12 = vweird.f32 %v3311_v63 }
 0x371   : > { %2679 = vst [vmem:[%s4545_s28 + $0x38] sm:$0xff] %v2271_v22  ;;  %3314 = vpow2.f32 %v3170_v14  ;;  %v2587_v35 = vrot.slane %v2586_v37, 2  ;;  %vm2326_vm1 = vmor %vm2324_vm14, %vm2325_vm12  ;;  %vm2314_vm4 = vcmp.eq.f32.partialorder %v2313_v33, 8.507059e+37  ;;  %vm2356_vm14 = vcmp.lt.s32.totalorder %v4519_v28, 6 }
 0x372   : > { %3316 = vpow2.f32 %v3173_v25  ;;  %v2568_v12 = vsel %vm2362_vm11, %v2553_v32, 0.0  ;;  %2676 = vst [vmem:[%s4545_s28 + $0x20] sm:$0xff] %v2268_v7  ;;  %v3313_v13 = vpop.eup %3312  ;;  %v2321_v49 = vsub.f32 1.0, %v2320_v10  ;;  %v2317_v4 = vsel %vm2314_vm4, %v2316_v6, %v2312_v1 }
 0x373   : > { %v2593_v30 = vrot.slane %v2568_v12, 4  ;;  %v4559_v43 = vadd.f32 1.0, %v3313_v13  ;;  %v2588_v16 = vadd.f32 %v2587_v35, %v2586_v37 }
 0x374   : > { %v2169_v55 = vpop.f32.mrf.mxu3  ;;  %v2322_v19 = vmul.f32 %v3311_v63, %v2321_v49  ;;  %v2285_v44 = vpop.f32.mrf.mxu1 }
 0x375   : > { %v2594_v3 = vadd.f32 %v2593_v30, %v2568_v12  ;;  %3318 = vrcp.f32 %v4559_v43  ;;  %v2589_v17 = vrot.slane %v2588_v16, 1  ;;  %v2286_v38 = vadd.f32 %v2285_v44, %v4543_v15 }
 0x376   : > { %v2272_v36 = vpop.f32.mrf.mxu2  ;;  %v2323_v5 = vadd.f32 %v3311_v63, %v2322_v19  ;;  %v2433_v25 = vand.u32 2147483648, %v4559_v43  ;;  %vm2427_vm8 = vweird.f32 %v4559_v43 }
 0x377   : > { %v3315_v53 = vpop.eup %3314  ;;  %v2595_v47 = vrot.slane %v2594_v3, 2  ;;  %v2590_v46 = vadd.f32 %v2589_v17, %v2588_v16  ;;  %2677 = vst [vmem:[%s4545_s28 + $0x28] sm:$0xff] %v2286_v38 }
 0x378   : > { %v3317_v62 = vpop.eup %3316  ;;  %v4571_v59 = vadd.f32 1.0, %v3315_v53  ;;  %v2327_v39 = vsel %vm2326_vm1, %v3311_v63, %v2323_v5  ;;  %v2434_v33 = vor.u32 1.1754944e-38, %v2433_v25 }
 0x379   : > { %v4579_v18 = vadd.f32 1.0, %v3317_v62  ;;  %v2332_v50 = vsel %vm2329_vm3, %v2331_v42, %v2327_v39  ;;  %v4586_v41 = vmax.f32 %v2590_v46, 1e-24  ;;  %v2596_v57 = vadd.f32 %v2595_v47, %v2594_v3 }
 0x37a   : > { %3320 = vrcp.f32 %v4571_v59  ;;  %v2667_v51 = vrot.slane %v2332_v50, 4  ;;  %v2343_v45 = vand.u32 2147483647, %v4571_v59  ;;  %v2345_v35 = vand.u32 2147483648, %v4571_v59 }
 0x37b   : > { %3322 = vrcp.f32 %v4579_v18  ;;  %v4589_v27 = vpop.eup %3318  ;;  %v2597_v9 = vrot.slane %v2596_v57, 1  ;;  %vm2339_vm7 = vweird.f32 %v4571_v59  ;;  %v2431_v3 = vand.u32 2147483647, %v4559_v43 }
 0x37c   : > { %v2247_v52 = vpop.f32.mrf.mxu3  ;;  %v2423_v8 = vmul.f32 %v4589_v27, %v4559_v43  ;;  %3324 = vrsqrt.f32 %v4586_v41  ;;  %v2288_v24 = vpop.f32.mrf.mxu1  ;;  %v2668_v21 = vsel %vm461_vm0, %v2317_v4, %v2667_v51  ;;  %vm2353_vm0 = vcmp.ge.s32.totalorder %v4519_v28, 3 }
 0x37d   : > { %2670 = vst [vmem:[%s4594_s15] sm:$0x77] %v2668_v21  ;;  %v4602_v31 = vadd.f32 %v2247_v52, %v4514_v20  ;;  %v2289_v11 = vadd.f32 %v2288_v24, %v4535_v23  ;;  %v2598_v22 = vadd.f32 %v2597_v9, %v2596_v57  ;;  %vm2428_vm6 = vweird.f32 %v4589_v27  ;;  %vm4655_vm4 = vmand %vm2353_vm0, %vm2356_vm14 }
 0x37e   : > { %v2424_v56 = vsub.f32 1.0, %v2423_v8  ;;  %v2346_v36 = vor.u32 1.1754944e-38, %v2345_v35  ;;  %vm4632_vm10 = vmor %vm2427_vm8, %vm2428_vm6  ;;  %vm2344_vm12 = vcmp.eq.f32.partialorder %v2343_v45, 8.507059e+37  ;;  %vm2432_vm15 = vcmp.eq.f32.partialorder %v2431_v3, 8.507059e+37 }
 0x37f   : > { %2680 = vst [vmem:[%s4545_s28 + $0x40] sm:$0xff] %v2289_v11  ;;  %v3171_v63 = vmul.f32 -1.442695, %v4602_v31  ;;  %v2551_v20 = vmul.f32 %v4602_v31, %v4602_v31  ;;  %v4616_v7 = vmax.f32 %v2598_v22, 1e-24  ;;  %vm2618_vm1 = vweird.f32 %v4586_v41 }
 0x380   : > { %v3321_v61 = vpop.eup %3320  ;;  %v2425_v14 = vmul.f32 %v4589_v27, %v2424_v56  ;;  %v2446_v4 = vand.u32 2147483647, %v4579_v18  ;;  %v2448_v8 = vand.u32 2147483648, %v4579_v18 }
 0x381   : > { %v4605_v34 = vpop.eup %3322  ;;  %v2335_v48 = vmul.f32 %v3321_v61, %v4571_v59  ;;  %3326 = vpow2.f32 %v3171_v63  ;;  %vm2340_vm5 = vweird.f32 %v3321_v61  ;;  %v2566_v16 = vsel %vm2362_vm11, %v2551_v20, 0.0 }
 0x382   : > { %v2438_v2 = vmul.f32 %v4605_v34, %v4579_v18  ;;  %v3325_v37 = vpop.eup %3324  ;;  %3328 = vrsqrt.f32 %v4616_v7  ;;  %v2426_v58 = vadd.f32 %v4589_v27, %v2425_v14  ;;  %v2577_v19 = vrot.slane %v2566_v16, 4  ;;  %vm2341_vm9 = vmor %vm2339_vm7, %vm2340_vm5 }
 0x383   : > { %v2336_v32 = vsub.f32 1.0, %v2335_v48  ;;  %v2613_v10 = vmul.f32 %v3325_v37, %v4586_v41  ;;  %vm2619_vm13 = vweird.f32 %v3325_v37  ;;  %vm2443_vm3 = vweird.f32 %v4605_v34 }
 0x384   : > { %v2249_v12 = vpop.f32.mrf.mxu3  ;;  %v2439_v49 = vsub.f32 1.0, %v2438_v2  ;;  %v2290_v30 = vpop.f32.mrf.mxu1  ;;  %v2578_v17 = vadd.f32 %v2577_v19, %v2566_v16  ;;  %v2430_v43 = vsel %vm4632_vm10, %v4589_v27, %v2426_v58  ;;  %vm2620_vm2 = vmor %vm2618_vm1, %vm2619_vm13  ;;  %vm2442_vm5 = vweird.f32 %v4579_v18 }
 0x385   : > { %v2337_v13 = vmul.f32 %v3321_v61, %v2336_v32  ;;  %v2614_v0 = vmul.f32 %v3325_v37, %v2613_v10  ;;  %v2250_v60 = vadd.f32 %v2249_v12, %v4543_v15  ;;  %v2435_v1 = vsel %vm2432_vm15, %v2434_v33, %v2430_v43  ;;  %vm4663_vm6 = vmor %vm2442_vm5, %vm2443_vm3 }
 0x386   : > { %v2440_v5 = vmul.f32 %v4605_v34, %v2439_v49  ;;  %v2579_v59 = vrot.slane %v2578_v17, 2  ;;  %v3181_v24 = vadd.f32 -0.5, %v2435_v1  ;;  %vm2447_vm7 = vcmp.eq.f32.partialorder %v2446_v4, 8.507059e+37 }
 0x387   : > { %v2338_v55 = vadd.f32 %v3321_v61, %v2337_v13  ;;  %v2615_v44 = vmul.f32 0.5, %v2614_v0  ;;  %2675 = vst [vmem:[%s4545_s28 + $0x18] sm:$0xff] %v2250_v60  ;;  %v3327_v15 = vpop.eup %3326  ;;  %v2449_v14 = vor.u32 1.1754944e-38, %v2448_v8  ;;  %vm2628_vm8 = vweird.f32 %v4616_v7 }
 0x388   : > { %v3329_v62 = vpop.eup %3328  ;;  %v4643_v42 = vadd.f32 1.0, %v3327_v15  ;;  %v2441_v6 = vadd.f32 %v4605_v34, %v2440_v5  ;;  %v2580_v57 = vadd.f32 %v2579_v59, %v2578_v17 }
 0x389   : > { %v2342_v53 = vsel %vm2341_vm9, %v3321_v61, %v2338_v55  ;;  %v2616_v47 = vsub.f32 1.5, %v2615_v44  ;;  %v2623_v39 = vmul.f32 %v3329_v62, %v4616_v7  ;;  %vm2629_vm0 = vweird.f32 %v3329_v62 }
 0x38a   : > { %v2347_v38 = vsel %vm2344_vm12, %v2346_v36, %v2342_v53  ;;  %3330 = vrcp.f32 %v4643_v42  ;;  %v2581_v56 = vrot.slane %v2580_v57, 1  ;;  %v2445_v11 = vsel %vm4663_vm6, %v4605_v34, %v2441_v6  ;;  %vm2630_vm9 = vmor %vm2628_vm8, %vm2629_vm0 }
 0x38b   : > { %2671 = vst [vmem:[%s4594_s15 + $0x8] sm:$0x7] %v2347_v38  ;;  %v2617_v29 = vmul.f32 %v3325_v37, %v2616_v47  ;;  %v2624_v51 = vmul.f32 %v3329_v62, %v2623_v39  ;;  %v2418_v58 = vand.u32 2147483648, %v4643_v42  ;;  %vm2412_vm12 = vweird.f32 %v4643_v42 }
 0x38c   : > { %v2252_v46 = vpop.f32.mrf.mxu3  ;;  %v2582_v48 = vadd.f32 %v2581_v56, %v2580_v57  ;;  %v2416_v0 = vand.u32 2147483647, %v4643_v42 }
 0x38d   : > { %v2621_v50 = vsel %vm2620_vm2, %v3325_v37, %v2617_v29  ;;  %v2253_v27 = vadd.f32 %v2252_v46, %v4535_v23  ;;  %v2625_v21 = vmul.f32 0.5, %v2624_v51  ;;  %v2450_v37 = vsel %vm2447_vm7, %v2449_v14, %v2445_v11 }
 0x38e   : > { %v2633_v52 = vmul.f32 %v2621_v50, %v4524_v54  ;;  %v2599_v63 = vmax.f32 %v2582_v48, 1e-24  ;;  %v3182_v10 = vadd.f32 -0.5, %v2450_v37  ;;  %v2419_v19 = vor.u32 1.1754944e-38, %v2418_v58 }
 0x38f   : > { %2678 = vst [vmem:[%s4545_s28 + $0x30] sm:$0xff] %v2253_v27  ;;  %v2626_v18 = vsub.f32 1.5, %v2625_v21  ;;  %vm2417_vm15 = vcmp.eq.f32.partialorder %v2416_v0, 8.507059e+37 }
 0x390   : > { %v2642_v9 = vsel %vm2362_vm11, %v2633_v52, %v4524_v54  ;;  %v3331_v22 = vpop.eup %3330  ;;  %3332 = vrsqrt.f32 %v2599_v63  ;;  %vm2608_vm1 = vweird.f32 %v2599_v63 }
 0x391   : > { %v2657_v61 = vsel %vm4655_vm4, %v3181_v24, %v2642_v9  ;;  %v2627_v2 = vmul.f32 %v3329_v62, %v2626_v18  ;;  %v2408_v54 = vmul.f32 %v3331_v22, %v4643_v42  ;;  %vm2413_vm10 = vweird.f32 %v3331_v22 }
 0x392   : > { %2673 = vst [vmem:[%s4545_s28 + $0x8] sm:$0xff] %v2657_v61  ;;  %vm2414_vm13 = vmor %vm2412_vm12, %vm2413_vm10 }
 0x393   : > { %v2631_v34 = vsel %vm2630_vm9, %v3329_v62, %v2627_v2  ;;  %v2409_v32 = vsub.f32 1.0, %v2408_v54 }
 0x394   : > { %v2254_v20 = vpop.f32.mrf.mxu3  ;;  %v2634_v25 = vmul.f32 %v2631_v34, %v4541_v26 }
 0x395   : > { %v2410_v35 = vmul.f32 %v3331_v22, %v2409_v32 }
 0x396   : > { %v2643_v45 = vsel %vm2362_vm11, %v2634_v25, %v4541_v26  ;;  %v3333_v12 = vpop.eup %3332 }
 0x397   : > { %v2658_v7 = vsel %vm4655_vm4, %v3182_v10, %v2643_v45  ;;  %v2603_v13 = vmul.f32 %v3333_v12, %v2599_v63  ;;  %v2411_v49 = vadd.f32 %v3331_v22, %v2410_v35  ;;  %vm2609_vm14 = vweird.f32 %v3333_v12 }
 0x398   : > { %2674 = vst [vmem:[%s4545_s28 + $0x10] sm:$0xff] %v2658_v7  ;;  %vm2610_vm2 = vmor %vm2608_vm1, %vm2609_vm14 }
 0x399   : > { %v2604_v30 = vmul.f32 %v3333_v12, %v2603_v13  ;;  %v2415_v26 = vsel %vm2414_vm13, %v3331_v22, %v2411_v49 }
 0x39a   : > { %v2420_v3 = vsel %vm2417_vm15, %v2419_v19, %v2415_v26 }
 0x39b   : > { %v2605_v16 = vmul.f32 0.5, %v2604_v30  ;;  %v3180_v40 = vadd.f32 -0.5, %v2420_v3 }
 0x39d   : > { %v2606_v55 = vsub.f32 1.5, %v2605_v16 }
 0x39f   : > { %v2607_v60 = vmul.f32 %v3333_v12, %v2606_v55 }
 0x3a1   : > { %v2611_v44 = vsel %vm2610_vm2, %v3333_v12, %v2607_v60 }
 0x3a2   : > { %v2632_v36 = vmul.f32 %v2611_v44, %v4602_v31 }
 0x3a4   : > { %v2641_v53 = vsel %vm2362_vm11, %v2632_v36, %v4602_v31 }
 0x3a5   : > { %v2656_v5 = vsel %vm4655_vm4, %v3180_v40, %v2641_v53 }
 0x3a6   : > { %2672 = vst [vmem:[%s4545_s28] sm:$0xff] %v2656_v5 }
 0x3a7   : > { %3361 = shalt.err (!%p3358_p5)
}
 0x3a8   : > { %s3423_s25 = smov 384   ;;  %s3424_s28 = smov 24  }
 0x3a9   : > { %3235 = dma.vmem_to_hbm [thread:$0]  (%p3515_p4), %s2710_s12, 1152, %s2712_s26, %s2691_s29, %s3423_s25, %s3423_s25, %s3424_s28  }
 0x3aa PF: > { %p3241_p6 = scmp.ge.s32.totalorder %s3412_s14, 2  ;;  %s2738_s15 = sand.u32 1, %s3392_s30  }
 0x3ab   : > { %s2739_s16 = scalar_lea.sflag [#allocation3], %s2738_s15 }
 0x3ac   : > { %p3238_p7 = pnand %p3241_p6, %p3522_p8 }
 0x3ae   : > { %p3239_p9 = pneg %p3238_p7 }
 0x3b0   : > { %3387 = dma.done.wait (%p3239_p9), %s2739_s16, 1152  }
 0x3b1   : > { %3389 = vsyncadd (%p3239_p9), %s2739_s16, 4294966144  ;;  %s23_s14 = sadd.s32 1, %s3412_s14   ;;  %s4755_s30 = smov %s3396_s10 }
 0x3b2   : > { %p20_p10 = scmp.ge.s32.totalorder %s23_s14, 4   ;;  %s4756_s10 = smov %s3400_s11 }
 0x3b3   : > { %s4757_s11 = smov %s3528_s22  ;;  %s4758_s12 = smov %s3408_s13 }
 0x3b4   : > { %s4759_s13 = smov %s4761_s17  ;;  %22 = sbr.rel (!%p20_p10) target bundleno = 4 (0x4), region = 107 }
 0x3b9   :  { %2745 = vsyncpa [#allocation3], 1 }
 0x3ba   :  { %2747 = vsyncpa [#allocation3 + $0x1], 1 }

</bundles_post_ra>
